<compile_context>
chip_gen: v7x
topology: tpu7x:2x2x1
jax: 0.10.0
libtpu: 0.0.40
codegen_flags: <defaults>
</compile_context>

<pallas_src>
import functools
import math

import jax
import jax.numpy as jnp
from jax import lax
from jax.experimental import pallas as pl
from jax.experimental.pallas import tpu as pltpu


# ----------------------------------------------------------------------------
# Fused kernel: q/kv projection + multi-head softmax attention, per batch
# ----------------------------------------------------------------------------
def _fused_attention_kernel(x_ref, g_ref, wq_ref, bq_ref, wkv_ref, bkv_ref,
                            o_ref, *, num_heads):
    """One grid step == one batch element; all intermediates stay in VMEM."""
    xb = x_ref[0]                                     # (N, C)
    gb = g_ref[0]                                     # (M, C)
    N, C = xb.shape
    hd = C // num_heads

    # ---- q projection (softmax scale already folded into wq / bq) ----------
    q = jnp.dot(xb, wq_ref[...], preferred_element_type=jnp.float32) + bq_ref[...]

    # ---- kv projection on [x ; global_tokens] -------------------------------
    xg = jnp.concatenate([xb, gb], axis=0)            # (N+M, C)
    kv = jnp.dot(xg, wkv_ref[...], preferred_element_type=jnp.float32) + bkv_ref[...]
    k = kv[:, :C]                                     # (N+M, C)
    v = kv[:, C:]                                     # (N+M, C)

    # ---- per-head attention (statically unrolled; heads never leave VMEM) ---
    # TODO(synk): with head_dim = C // num_heads = 4 the per-head score matmul
    #             is lane-padded on the MXU no matter how heads are batched;
    #             for large N, tile the token axis and pack heads per matmul.
    outs = []
    for h in range(num_heads):
        lo = h * hd
        qh = q[:, lo:lo + hd]                         # (N, hd)
        kh = k[:, lo:lo + hd]                         # (N+M, hd)
        vh = v[:, lo:lo + hd]                         # (N+M, hd)
        # q @ k^T without materializing a transpose of k.
        s = lax.dot_general(qh, kh, (((1,), (1,)), ((), ())),
                            preferred_element_type=jnp.float32)   # (N, N+M)
        s = s - jnp.max(s, axis=-1, keepdims=True)    # stable softmax (f32)
        p = jnp.exp(s)
        p = p * pl.reciprocal(jnp.sum(p, axis=-1, keepdims=True), approx=True)
        outs.append(jnp.dot(p, vh, preferred_element_type=jnp.float32))
    o = jnp.concatenate(outs, axis=-1)                # (N, h*hd) == (N, C)
    o_ref[0] = o.astype(o_ref.dtype)                  # matches (attn@v).transpose(1,2).reshape(B,N,C)


def fused_intra_domain_attention(x, global_tokens, wq, bq, wkv, bkv, num_heads):
    B, N, C = x.shape
    _, M, _ = global_tokens.shape
    kernel = functools.partial(_fused_attention_kernel, num_heads=num_heads)
    return pl.pallas_call(
        kernel,
        out_shape=jax.ShapeDtypeStruct((B, N, C), x.dtype),
        grid=(B,),
        in_specs=[
            pl.BlockSpec((1, N, C), lambda b: (b, 0, 0)),     # x slab for batch b
            pl.BlockSpec((1, M, C), lambda b: (b, 0, 0)),     # global tokens slab
            pl.BlockSpec((C, C), lambda b: (0, 0)),           # wq (VMEM-resident)
            pl.BlockSpec((1, C), lambda b: (0, 0)),           # bq
            pl.BlockSpec((C, 2 * C), lambda b: (0, 0)),       # wkv (VMEM-resident)
            pl.BlockSpec((1, 2 * C), lambda b: (0, 0)),       # bkv
        ],
        out_specs=pl.BlockSpec((1, N, C), lambda b: (b, 0, 0)),
        compiler_params=pltpu.CompilerParams(
            dimension_semantics=("parallel",),                # megacore shard over B
        ),
    )(x, global_tokens, wq, bq.reshape(1, C), wkv, bkv.reshape(1, 2 * C))


# ----------------------------------------------------------------------------
# Module wrapper (parameter setup only; forward is one pallas_call)
# ----------------------------------------------------------------------------
class IntraDomainAttention:
    def __init__(self, dim, num_heads=8, ratio=0.5, key=None, dtype=jnp.float32):
        assert dim % num_heads == 0
        self.dim = dim
        self.num_heads = num_heads
        self.head_dim = dim // num_heads
        self.ratio = ratio  # carried for parity; see TODO(synk) above
        self.scale = self.head_dim ** -0.5

        if key is None:
            key = jax.random.PRNGKey(0)
        k1, k2, k3, k4 = jax.random.split(key, 4)
        std = 1.0 / math.sqrt(dim)
        # q projection: (dim -> dim), kv projection: (dim -> 2*dim)
        self.wq = (jax.random.normal(k1, (dim, dim)) * std).astype(dtype)
        self.bq = (jax.random.normal(k2, (dim,)) * 0.01).astype(dtype)
        self.wkv = (jax.random.normal(k3, (dim, 2 * dim)) * std).astype(dtype)
        self.bkv = (jax.random.normal(k4, (2 * dim,)) * 0.01).astype(dtype)
        # Fold softmax scale into the q projection at init (free; removes an
        # elementwise pass over q in HBM at run time).
        self.wq_scaled = (self.wq * self.scale).astype(dtype)
        self.bq_scaled = (self.bq * self.scale).astype(dtype)

    def __call__(self, x, global_tokens):
        return fused_intra_domain_attention(
            x, global_tokens,
            self.wq_scaled, self.bq_scaled, self.wkv, self.bkv,
            self.num_heads)


# ----------------------------------------------------------------------------
# Reference (pure jnp) for sanity check
# ----------------------------------------------------------------------------
def reference_forward(mod, x, global_tokens):
    B, N, C = x.shape
    _, M, _ = global_tokens.shape
    h, hd = mod.num_heads, mod.head_dim
    q = (x.reshape(B * N, C) @ mod.wq + mod.bq).reshape(B, N, h, hd)
    q = q.transpose(0, 2, 1, 3) * mod.scale
    kv_in = jnp.concatenate([x, global_tokens], axis=1)
    kv = (kv_in.reshape(B * (N + M), C) @ mod.wkv + mod.bkv).reshape(B, N + M, 2, h, hd)
    k = kv[:, :, 0].transpose(0, 2, 1, 3)
    v = kv[:, :, 1].transpose(0, 2, 1, 3)
    attn = jnp.einsum("bhnd,bhmd->bhnm", q, k)
    attn = jax.nn.softmax(attn, axis=-1)
    o = jnp.einsum("bhnm,bhmd->bhnd", attn, v)
    return o.transpose(0, 2, 1, 3).reshape(B, N, C)


if __name__ == "__main__":
    B, N, M, C, heads = 2, 16, 8, 32, 8

    key = jax.random.PRNGKey(0)
    kx, kg, kp = jax.random.split(key, 3)
    x = jax.random.normal(kx, (B, N, C), dtype=jnp.float32)
    global_tokens = jax.random.normal(kg, (B, M, C), dtype=jnp.float32)

    mod = IntraDomainAttention(dim=C, num_heads=heads, ratio=0.5, key=kp)

    out = mod(x, global_tokens)
    out = jax.block_until_ready(out)

    ref = reference_forward(mod, x, global_tokens)
    assert out.shape == (B, N, C)
    # Tolerance covers the EUP approximate-reciprocal softmax normalization
    # (~2^-12 relative) on top of f32 MXU accumulation.
    assert jnp.allclose(out, ref, atol=2e-3, rtol=2e-3), "mismatch vs reference"

    print("KERNEL_OK")
</pallas_src>

<mosaic_0001>
module attributes {stable_mosaic.version = 11 : i64} {
  func.func @_fused_attention_kernel(%arg0: i32, %arg1: memref<1x16x32xf32, #tpu.memory_space<vmem>>, %arg2: memref<1x8x32xf32, #tpu.memory_space<vmem>>, %arg3: memref<32x32xf32, #tpu.memory_space<vmem>>, %arg4: memref<1x32xf32, #tpu.memory_space<vmem>>, %arg5: memref<32x64xf32, #tpu.memory_space<vmem>>, %arg6: memref<1x64xf32, #tpu.memory_space<vmem>>, %arg7: memref<1x16x32xf32, #tpu.memory_space<vmem>>) attributes {dimension_semantics = [#tpu.dimension_semantics<parallel>], iteration_bounds = array<i64: 2>, scalar_prefetch = 0 : i64, scratch_operands = 0 : i64, tpu.core_type = #tpu.core_type<tc>, window_params = [{transform_indices = @transform_0, window_bounds = array<i64: 1, 16, 32>}, {transform_indices = @transform_1, window_bounds = array<i64: 1, 8, 32>}, {pipeline_mode = #tpu.pipeline_mode<synchronous>, transform_indices = @transform_2, window_bounds = array<i64: 32, 32>}, {pipeline_mode = #tpu.pipeline_mode<synchronous>, transform_indices = @transform_3, window_bounds = array<i64: 1, 32>}, {pipeline_mode = #tpu.pipeline_mode<synchronous>, transform_indices = @transform_4, window_bounds = array<i64: 32, 64>}, {pipeline_mode = #tpu.pipeline_mode<synchronous>, transform_indices = @transform_5, window_bounds = array<i64: 1, 64>}, {transform_indices = @transform_6, window_bounds = array<i64: 1, 16, 32>}]} {
    %c0 = arith.constant 0 : index
    %c0_0 = arith.constant 0 : index
    %c0_1 = arith.constant 0 : index
    %0 = vector.load %arg1[%c0, %c0_0, %c0_1] : memref<1x16x32xf32, #tpu.memory_space<vmem>>, vector<1x16x32xf32>
    %1 = vector.shape_cast %0 : vector<1x16x32xf32> to vector<16x32xf32>
    %c0_2 = arith.constant 0 : index
    %c0_3 = arith.constant 0 : index
    %c0_4 = arith.constant 0 : index
    %2 = vector.load %arg2[%c0_2, %c0_3, %c0_4] : memref<1x8x32xf32, #tpu.memory_space<vmem>>, vector<1x8x32xf32>
    %3 = vector.shape_cast %2 : vector<1x8x32xf32> to vector<8x32xf32>
    %c0_5 = arith.constant 0 : index
    %c0_6 = arith.constant 0 : index
    %4 = vector.load %arg3[%c0_5, %c0_6] : memref<32x32xf32, #tpu.memory_space<vmem>>, vector<32x32xf32>
    %cst = arith.constant dense<0.000000e+00> : vector<16x32xf32>
    %5 = tpu.matmul %1, %4, %cst {dimension_numbers = #tpu.dot_dimension_numbers<[1], [0], [0], [1], [0, 0, 1, 1], [], []>} : vector<16x32xf32>, vector<32x32xf32>, vector<16x32xf32> -> vector<16x32xf32>
    %c0_7 = arith.constant 0 : index
    %c0_8 = arith.constant 0 : index
    %6 = vector.load %arg4[%c0_7, %c0_8] : memref<1x32xf32, #tpu.memory_space<vmem>>, vector<1x32xf32>
    %7 = vector.broadcast %6 : vector<1x32xf32> to vector<16x32xf32>
    %8 = arith.addf %5, %7 : vector<16x32xf32>
    %9 = tpu.concatenate %1, %3 in 0 : vector<16x32xf32>, vector<8x32xf32> -> vector<24x32xf32>
    %c0_9 = arith.constant 0 : index
    %c0_10 = arith.constant 0 : index
    %10 = vector.load %arg5[%c0_9, %c0_10] : memref<32x64xf32, #tpu.memory_space<vmem>>, vector<32x64xf32>
    %cst_11 = arith.constant dense<0.000000e+00> : vector<24x64xf32>
    %11 = tpu.matmul %9, %10, %cst_11 {dimension_numbers = #tpu.dot_dimension_numbers<[1], [0], [0], [1], [0, 0, 1, 1], [], []>} : vector<24x32xf32>, vector<32x64xf32>, vector<24x64xf32> -> vector<24x64xf32>
    %c0_12 = arith.constant 0 : index
    %c0_13 = arith.constant 0 : index
    %12 = vector.load %arg6[%c0_12, %c0_13] : memref<1x64xf32, #tpu.memory_space<vmem>>, vector<1x64xf32>
    %13 = vector.broadcast %12 : vector<1x64xf32> to vector<24x64xf32>
    %14 = arith.addf %11, %13 : vector<24x64xf32>
    %15 = vector.extract_strided_slice %14 {offsets = [0, 0], sizes = [24, 32], strides = [1, 1]} : vector<24x64xf32> to vector<24x32xf32>
    %16 = vector.extract_strided_slice %14 {offsets = [0, 32], sizes = [24, 32], strides = [1, 1]} : vector<24x64xf32> to vector<24x32xf32>
    %17 = vector.extract_strided_slice %8 {offsets = [0, 0], sizes = [16, 4], strides = [1, 1]} : vector<16x32xf32> to vector<16x4xf32>
    %18 = vector.extract_strided_slice %15 {offsets = [0, 0], sizes = [24, 4], strides = [1, 1]} : vector<24x32xf32> to vector<24x4xf32>
    %19 = vector.extract_strided_slice %16 {offsets = [0, 0], sizes = [24, 4], strides = [1, 1]} : vector<24x32xf32> to vector<24x4xf32>
    %cst_14 = arith.constant dense<0.000000e+00> : vector<16x24xf32>
    %20 = tpu.matmul %17, %18, %cst_14 {dimension_numbers = #tpu.dot_dimension_numbers<[1], [1], [0], [0], [0, 0, 1, 0], [], []>} : vector<16x4xf32>, vector<24x4xf32>, vector<16x24xf32> -> vector<16x24xf32>
    %cst_15 = arith.constant dense<0xFF800000> : vector<16xf32>
    %21 = vector.multi_reduction <maximumf>, %20, %cst_15 [1] : vector<16x24xf32> to vector<16xf32>
    %22 = vector.shape_cast %21 : vector<16xf32> to vector<16x1xf32>
    %23 = vector.broadcast %22 : vector<16x1xf32> to vector<16x24xf32>
    %24 = arith.subf %20, %23 : vector<16x24xf32>
    %25 = math.exp %24 : vector<16x24xf32>
    %cst_16 = arith.constant dense<0.000000e+00> : vector<16xf32>
    %26 = vector.multi_reduction <add>, %25, %cst_16 [1] : vector<16x24xf32> to vector<16xf32>
    %27 = vector.shape_cast %26 : vector<16xf32> to vector<16x1xf32>
    %28 = tpu.reciprocal %27 {approx = true} : vector<16x1xf32> -> vector<16x1xf32>
    %29 = vector.broadcast %28 : vector<16x1xf32> to vector<16x24xf32>
    %30 = arith.mulf %25, %29 : vector<16x24xf32>
    %cst_17 = arith.constant dense<0.000000e+00> : vector<16x4xf32>
    %31 = tpu.matmul %30, %19, %cst_17 {dimension_numbers = #tpu.dot_dimension_numbers<[1], [0], [0], [1], [0, 0, 1, 1], [], []>} : vector<16x24xf32>, vector<24x4xf32>, vector<16x4xf32> -> vector<16x4xf32>
    %32 = vector.extract_strided_slice %8 {offsets = [0, 4], sizes = [16, 4], strides = [1, 1]} : vector<16x32xf32> to vector<16x4xf32>
    %33 = vector.extract_strided_slice %15 {offsets = [0, 4], sizes = [24, 4], strides = [1, 1]} : vector<24x32xf32> to vector<24x4xf32>
    %34 = vector.extract_strided_slice %16 {offsets = [0, 4], sizes = [24, 4], strides = [1, 1]} : vector<24x32xf32> to vector<24x4xf32>
    %cst_18 = arith.constant dense<0.000000e+00> : vector<16x24xf32>
    %35 = tpu.matmul %32, %33, %cst_18 {dimension_numbers = #tpu.dot_dimension_numbers<[1], [1], [0], [0], [0, 0, 1, 0], [], []>} : vector<16x4xf32>, vector<24x4xf32>, vector<16x24xf32> -> vector<16x24xf32>
    %cst_19 = arith.constant dense<0xFF800000> : vector<16xf32>
    %36 = vector.multi_reduction <maximumf>, %35, %cst_19 [1] : vector<16x24xf32> to vector<16xf32>
    %37 = vector.shape_cast %36 : vector<16xf32> to vector<16x1xf32>
    %38 = vector.broadcast %37 : vector<16x1xf32> to vector<16x24xf32>
    %39 = arith.subf %35, %38 : vector<16x24xf32>
    %40 = math.exp %39 : vector<16x24xf32>
    %cst_20 = arith.constant dense<0.000000e+00> : vector<16xf32>
    %41 = vector.multi_reduction <add>, %40, %cst_20 [1] : vector<16x24xf32> to vector<16xf32>
    %42 = vector.shape_cast %41 : vector<16xf32> to vector<16x1xf32>
    %43 = tpu.reciprocal %42 {approx = true} : vector<16x1xf32> -> vector<16x1xf32>
    %44 = vector.broadcast %43 : vector<16x1xf32> to vector<16x24xf32>
    %45 = arith.mulf %40, %44 : vector<16x24xf32>
    %cst_21 = arith.constant dense<0.000000e+00> : vector<16x4xf32>
    %46 = tpu.matmul %45, %34, %cst_21 {dimension_numbers = #tpu.dot_dimension_numbers<[1], [0], [0], [1], [0, 0, 1, 1], [], []>} : vector<16x24xf32>, vector<24x4xf32>, vector<16x4xf32> -> vector<16x4xf32>
    %47 = vector.extract_strided_slice %8 {offsets = [0, 8], sizes = [16, 4], strides = [1, 1]} : vector<16x32xf32> to vector<16x4xf32>
    %48 = vector.extract_strided_slice %15 {offsets = [0, 8], sizes = [24, 4], strides = [1, 1]} : vector<24x32xf32> to vector<24x4xf32>
    %49 = vector.extract_strided_slice %16 {offsets = [0, 8], sizes = [24, 4], strides = [1, 1]} : vector<24x32xf32> to vector<24x4xf32>
    %cst_22 = arith.constant dense<0.000000e+00> : vector<16x24xf32>
    %50 = tpu.matmul %47, %48, %cst_22 {dimension_numbers = #tpu.dot_dimension_numbers<[1], [1], [0], [0], [0, 0, 1, 0], [], []>} : vector<16x4xf32>, vector<24x4xf32>, vector<16x24xf32> -> vector<16x24xf32>
    %cst_23 = arith.constant dense<0xFF800000> : vector<16xf32>
    %51 = vector.multi_reduction <maximumf>, %50, %cst_23 [1] : vector<16x24xf32> to vector<16xf32>
    %52 = vector.shape_cast %51 : vector<16xf32> to vector<16x1xf32>
    %53 = vector.broadcast %52 : vector<16x1xf32> to vector<16x24xf32>
    %54 = arith.subf %50, %53 : vector<16x24xf32>
    %55 = math.exp %54 : vector<16x24xf32>
    %cst_24 = arith.constant dense<0.000000e+00> : vector<16xf32>
    %56 = vector.multi_reduction <add>, %55, %cst_24 [1] : vector<16x24xf32> to vector<16xf32>
    %57 = vector.shape_cast %56 : vector<16xf32> to vector<16x1xf32>
    %58 = tpu.reciprocal %57 {approx = true} : vector<16x1xf32> -> vector<16x1xf32>
    %59 = vector.broadcast %58 : vector<16x1xf32> to vector<16x24xf32>
    %60 = arith.mulf %55, %59 : vector<16x24xf32>
    %cst_25 = arith.constant dense<0.000000e+00> : vector<16x4xf32>
    %61 = tpu.matmul %60, %49, %cst_25 {dimension_numbers = #tpu.dot_dimension_numbers<[1], [0], [0], [1], [0, 0, 1, 1], [], []>} : vector<16x24xf32>, vector<24x4xf32>, vector<16x4xf32> -> vector<16x4xf32>
    %62 = vector.extract_strided_slice %8 {offsets = [0, 12], sizes = [16, 4], strides = [1, 1]} : vector<16x32xf32> to vector<16x4xf32>
    %63 = vector.extract_strided_slice %15 {offsets = [0, 12], sizes = [24, 4], strides = [1, 1]} : vector<24x32xf32> to vector<24x4xf32>
    %64 = vector.extract_strided_slice %16 {offsets = [0, 12], sizes = [24, 4], strides = [1, 1]} : vector<24x32xf32> to vector<24x4xf32>
    %cst_26 = arith.constant dense<0.000000e+00> : vector<16x24xf32>
    %65 = tpu.matmul %62, %63, %cst_26 {dimension_numbers = #tpu.dot_dimension_numbers<[1], [1], [0], [0], [0, 0, 1, 0], [], []>} : vector<16x4xf32>, vector<24x4xf32>, vector<16x24xf32> -> vector<16x24xf32>
    %cst_27 = arith.constant dense<0xFF800000> : vector<16xf32>
    %66 = vector.multi_reduction <maximumf>, %65, %cst_27 [1] : vector<16x24xf32> to vector<16xf32>
    %67 = vector.shape_cast %66 : vector<16xf32> to vector<16x1xf32>
    %68 = vector.broadcast %67 : vector<16x1xf32> to vector<16x24xf32>
    %69 = arith.subf %65, %68 : vector<16x24xf32>
    %70 = math.exp %69 : vector<16x24xf32>
    %cst_28 = arith.constant dense<0.000000e+00> : vector<16xf32>
    %71 = vector.multi_reduction <add>, %70, %cst_28 [1] : vector<16x24xf32> to vector<16xf32>
    %72 = vector.shape_cast %71 : vector<16xf32> to vector<16x1xf32>
    %73 = tpu.reciprocal %72 {approx = true} : vector<16x1xf32> -> vector<16x1xf32>
    %74 = vector.broadcast %73 : vector<16x1xf32> to vector<16x24xf32>
    %75 = arith.mulf %70, %74 : vector<16x24xf32>
    %cst_29 = arith.constant dense<0.000000e+00> : vector<16x4xf32>
    %76 = tpu.matmul %75, %64, %cst_29 {dimension_numbers = #tpu.dot_dimension_numbers<[1], [0], [0], [1], [0, 0, 1, 1], [], []>} : vector<16x24xf32>, vector<24x4xf32>, vector<16x4xf32> -> vector<16x4xf32>
    %77 = vector.extract_strided_slice %8 {offsets = [0, 16], sizes = [16, 4], strides = [1, 1]} : vector<16x32xf32> to vector<16x4xf32>
    %78 = vector.extract_strided_slice %15 {offsets = [0, 16], sizes = [24, 4], strides = [1, 1]} : vector<24x32xf32> to vector<24x4xf32>
    %79 = vector.extract_strided_slice %16 {offsets = [0, 16], sizes = [24, 4], strides = [1, 1]} : vector<24x32xf32> to vector<24x4xf32>
    %cst_30 = arith.constant dense<0.000000e+00> : vector<16x24xf32>
    %80 = tpu.matmul %77, %78, %cst_30 {dimension_numbers = #tpu.dot_dimension_numbers<[1], [1], [0], [0], [0, 0, 1, 0], [], []>} : vector<16x4xf32>, vector<24x4xf32>, vector<16x24xf32> -> vector<16x24xf32>
    %cst_31 = arith.constant dense<0xFF800000> : vector<16xf32>
    %81 = vector.multi_reduction <maximumf>, %80, %cst_31 [1] : vector<16x24xf32> to vector<16xf32>
    %82 = vector.shape_cast %81 : vector<16xf32> to vector<16x1xf32>
    %83 = vector.broadcast %82 : vector<16x1xf32> to vector<16x24xf32>
    %84 = arith.subf %80, %83 : vector<16x24xf32>
    %85 = math.exp %84 : vector<16x24xf32>
    %cst_32 = arith.constant dense<0.000000e+00> : vector<16xf32>
    %86 = vector.multi_reduction <add>, %85, %cst_32 [1] : vector<16x24xf32> to vector<16xf32>
    %87 = vector.shape_cast %86 : vector<16xf32> to vector<16x1xf32>
    %88 = tpu.reciprocal %87 {approx = true} : vector<16x1xf32> -> vector<16x1xf32>
    %89 = vector.broadcast %88 : vector<16x1xf32> to vector<16x24xf32>
    %90 = arith.mulf %85, %89 : vector<16x24xf32>
    %cst_33 = arith.constant dense<0.000000e+00> : vector<16x4xf32>
    %91 = tpu.matmul %90, %79, %cst_33 {dimension_numbers = #tpu.dot_dimension_numbers<[1], [0], [0], [1], [0, 0, 1, 1], [], []>} : vector<16x24xf32>, vector<24x4xf32>, vector<16x4xf32> -> vector<16x4xf32>
    %92 = vector.extract_strided_slice %8 {offsets = [0, 20], sizes = [16, 4], strides = [1, 1]} : vector<16x32xf32> to vector<16x4xf32>
    %93 = vector.extract_strided_slice %15 {offsets = [0, 20], sizes = [24, 4], strides = [1, 1]} : vector<24x32xf32> to vector<24x4xf32>
    %94 = vector.extract_strided_slice %16 {offsets = [0, 20], sizes = [24, 4], strides = [1, 1]} : vector<24x32xf32> to vector<24x4xf32>
    %cst_34 = arith.constant dense<0.000000e+00> : vector<16x24xf32>
    %95 = tpu.matmul %92, %93, %cst_34 {dimension_numbers = #tpu.dot_dimension_numbers<[1], [1], [0], [0], [0, 0, 1, 0], [], []>} : vector<16x4xf32>, vector<24x4xf32>, vector<16x24xf32> -> vector<16x24xf32>
    %cst_35 = arith.constant dense<0xFF800000> : vector<16xf32>
    %96 = vector.multi_reduction <maximumf>, %95, %cst_35 [1] : vector<16x24xf32> to vector<16xf32>
    %97 = vector.shape_cast %96 : vector<16xf32> to vector<16x1xf32>
    %98 = vector.broadcast %97 : vector<16x1xf32> to vector<16x24xf32>
    %99 = arith.subf %95, %98 : vector<16x24xf32>
    %100 = math.exp %99 : vector<16x24xf32>
    %cst_36 = arith.constant dense<0.000000e+00> : vector<16xf32>
    %101 = vector.multi_reduction <add>, %100, %cst_36 [1] : vector<16x24xf32> to vector<16xf32>
    %102 = vector.shape_cast %101 : vector<16xf32> to vector<16x1xf32>
    %103 = tpu.reciprocal %102 {approx = true} : vector<16x1xf32> -> vector<16x1xf32>
    %104 = vector.broadcast %103 : vector<16x1xf32> to vector<16x24xf32>
    %105 = arith.mulf %100, %104 : vector<16x24xf32>
    %cst_37 = arith.constant dense<0.000000e+00> : vector<16x4xf32>
    %106 = tpu.matmul %105, %94, %cst_37 {dimension_numbers = #tpu.dot_dimension_numbers<[1], [0], [0], [1], [0, 0, 1, 1], [], []>} : vector<16x24xf32>, vector<24x4xf32>, vector<16x4xf32> -> vector<16x4xf32>
    %107 = vector.extract_strided_slice %8 {offsets = [0, 24], sizes = [16, 4], strides = [1, 1]} : vector<16x32xf32> to vector<16x4xf32>
    %108 = vector.extract_strided_slice %15 {offsets = [0, 24], sizes = [24, 4], strides = [1, 1]} : vector<24x32xf32> to vector<24x4xf32>
    %109 = vector.extract_strided_slice %16 {offsets = [0, 24], sizes = [24, 4], strides = [1, 1]} : vector<24x32xf32> to vector<24x4xf32>
    %cst_38 = arith.constant dense<0.000000e+00> : vector<16x24xf32>
    %110 = tpu.matmul %107, %108, %cst_38 {dimension_numbers = #tpu.dot_dimension_numbers<[1], [1], [0], [0], [0, 0, 1, 0], [], []>} : vector<16x4xf32>, vector<24x4xf32>, vector<16x24xf32> -> vector<16x24xf32>
    %cst_39 = arith.constant dense<0xFF800000> : vector<16xf32>
    %111 = vector.multi_reduction <maximumf>, %110, %cst_39 [1] : vector<16x24xf32> to vector<16xf32>
    %112 = vector.shape_cast %111 : vector<16xf32> to vector<16x1xf32>
    %113 = vector.broadcast %112 : vector<16x1xf32> to vector<16x24xf32>
    %114 = arith.subf %110, %113 : vector<16x24xf32>
    %115 = math.exp %114 : vector<16x24xf32>
    %cst_40 = arith.constant dense<0.000000e+00> : vector<16xf32>
    %116 = vector.multi_reduction <add>, %115, %cst_40 [1] : vector<16x24xf32> to vector<16xf32>
    %117 = vector.shape_cast %116 : vector<16xf32> to vector<16x1xf32>
    %118 = tpu.reciprocal %117 {approx = true} : vector<16x1xf32> -> vector<16x1xf32>
    %119 = vector.broadcast %118 : vector<16x1xf32> to vector<16x24xf32>
    %120 = arith.mulf %115, %119 : vector<16x24xf32>
    %cst_41 = arith.constant dense<0.000000e+00> : vector<16x4xf32>
    %121 = tpu.matmul %120, %109, %cst_41 {dimension_numbers = #tpu.dot_dimension_numbers<[1], [0], [0], [1], [0, 0, 1, 1], [], []>} : vector<16x24xf32>, vector<24x4xf32>, vector<16x4xf32> -> vector<16x4xf32>
    %122 = vector.extract_strided_slice %8 {offsets = [0, 28], sizes = [16, 4], strides = [1, 1]} : vector<16x32xf32> to vector<16x4xf32>
    %123 = vector.extract_strided_slice %15 {offsets = [0, 28], sizes = [24, 4], strides = [1, 1]} : vector<24x32xf32> to vector<24x4xf32>
    %124 = vector.extract_strided_slice %16 {offsets = [0, 28], sizes = [24, 4], strides = [1, 1]} : vector<24x32xf32> to vector<24x4xf32>
    %cst_42 = arith.constant dense<0.000000e+00> : vector<16x24xf32>
    %125 = tpu.matmul %122, %123, %cst_42 {dimension_numbers = #tpu.dot_dimension_numbers<[1], [1], [0], [0], [0, 0, 1, 0], [], []>} : vector<16x4xf32>, vector<24x4xf32>, vector<16x24xf32> -> vector<16x24xf32>
    %cst_43 = arith.constant dense<0xFF800000> : vector<16xf32>
    %126 = vector.multi_reduction <maximumf>, %125, %cst_43 [1] : vector<16x24xf32> to vector<16xf32>
    %127 = vector.shape_cast %126 : vector<16xf32> to vector<16x1xf32>
    %128 = vector.broadcast %127 : vector<16x1xf32> to vector<16x24xf32>
    %129 = arith.subf %125, %128 : vector<16x24xf32>
    %130 = math.exp %129 : vector<16x24xf32>
    %cst_44 = arith.constant dense<0.000000e+00> : vector<16xf32>
    %131 = vector.multi_reduction <add>, %130, %cst_44 [1] : vector<16x24xf32> to vector<16xf32>
    %132 = vector.shape_cast %131 : vector<16xf32> to vector<16x1xf32>
    %133 = tpu.reciprocal %132 {approx = true} : vector<16x1xf32> -> vector<16x1xf32>
    %134 = vector.broadcast %133 : vector<16x1xf32> to vector<16x24xf32>
    %135 = arith.mulf %130, %134 : vector<16x24xf32>
    %cst_45 = arith.constant dense<0.000000e+00> : vector<16x4xf32>
    %136 = tpu.matmul %135, %124, %cst_45 {dimension_numbers = #tpu.dot_dimension_numbers<[1], [0], [0], [1], [0, 0, 1, 1], [], []>} : vector<16x24xf32>, vector<24x4xf32>, vector<16x4xf32> -> vector<16x4xf32>
    %137 = tpu.concatenate %31, %46, %61, %76, %91, %106, %121, %136 in 1 : vector<16x4xf32>, vector<16x4xf32>, vector<16x4xf32>, vector<16x4xf32>, vector<16x4xf32>, vector<16x4xf32>, vector<16x4xf32>, vector<16x4xf32> -> vector<16x32xf32>
    %c0_46 = arith.constant 0 : index
    %c0_47 = arith.constant 0 : index
    %c0_48 = arith.constant 0 : index
    %138 = vector.load %arg7[%c0_46, %c0_47, %c0_48] : memref<1x16x32xf32, #tpu.memory_space<vmem>>, vector<1x16x32xf32>
    %139 = vector.shape_cast %138 : vector<1x16x32xf32> to vector<16x32xf32>
    %140 = vector.shape_cast %137 : vector<16x32xf32> to vector<1x16x32xf32>
    tpu.vector_store %arg7[%c0_46, %c0_47, %c0_48], %140 {strides = array<i32>} : memref<1x16x32xf32, #tpu.memory_space<vmem>>, vector<1x16x32xf32>,
    return
  }
  func.func @transform_0(%arg0: i32) -> (i32, i32, i32) {
    %c0_i32 = arith.constant 0 : i32
    %c0_i32_0 = arith.constant 0 : i32
    %c0_i32_1 = arith.constant 0 : i32
    return %arg0, %c0_i32, %c0_i32_0 : i32, i32, i32
  }
  func.func @transform_1(%arg0: i32) -> (i32, i32, i32) {
    %c0_i32 = arith.constant 0 : i32
    %c0_i32_0 = arith.constant 0 : i32
    %c0_i32_1 = arith.constant 0 : i32
    return %arg0, %c0_i32, %c0_i32_0 : i32, i32, i32
  }
  func.func @transform_2(%arg0: i32) -> (i32, i32) {
    %c0_i32 = arith.constant 0 : i32
    %c0_i32_0 = arith.constant 0 : i32
    %c0_i32_1 = arith.constant 0 : i32
    return %c0_i32, %c0_i32_0 : i32, i32
  }
  func.func @transform_3(%arg0: i32) -> (i32, i32) {
    %c0_i32 = arith.constant 0 : i32
    %c0_i32_0 = arith.constant 0 : i32
    %c0_i32_1 = arith.constant 0 : i32
    return %c0_i32, %c0_i32_0 : i32, i32
  }
  func.func @transform_4(%arg0: i32) -> (i32, i32) {
    %c0_i32 = arith.constant 0 : i32
    %c0_i32_0 = arith.constant 0 : i32
    %c0_i32_1 = arith.constant 0 : i32
    return %c0_i32, %c0_i32_0 : i32, i32
  }
  func.func @transform_5(%arg0: i32) -> (i32, i32) {
    %c0_i32 = arith.constant 0 : i32
    %c0_i32_0 = arith.constant 0 : i32
    %c0_i32_1 = arith.constant 0 : i32
    return %c0_i32, %c0_i32_0 : i32, i32
  }
  func.func @transform_6(%arg0: i32) -> (i32, i32, i32) {
    %c0_i32 = arith.constant 0 : i32
    %c0_i32_0 = arith.constant 0 : i32
    %c0_i32_1 = arith.constant 0 : i32
    return %arg0, %c0_i32, %c0_i32_0 : i32, i32, i32
  }
}

</mosaic_0001>

<bundles_post_ra>
// kernel: tpu_custom_call.1
= control target key start
LH: loop header
LB: loop body
LE: loop exit
PB: predicated region body
PF: predicated region fallthrough
CT: control target
= control target key end

     0   :  { %s3868_s0 = inlined_call_operand.hbm [shape: f32[2,16,32], index: 0, kind: input, shape index: {}]   ;;  %s3869_s1 = inlined_call_operand.hbm [shape: f32[2,8,32], index: 1, kind: input, shape index: {}]   ;;  %s3870_s2 = inlined_call_operand.hbm [shape: f32[32,32], index: 2, kind: input, shape index: {}]   ;;  %s3871_s3 = inlined_call_operand.vmem [shape: f32[1,32], index: 3, kind: input, shape index: {}]   ;;  %s3872_s4 = inlined_call_operand.hbm [shape: f32[32,64], index: 4, kind: input, shape index: {}]   ;;  %s3873_s5 = inlined_call_operand.vmem [shape: f32[1,64], index: 5, kind: input, shape index: {}]   ;;  %s3874_s6 = inlined_call_operand.hbm [shape: f32[2,16,32], index: 6, kind: output, shape index: {}]  }
   0x1   :  { %3881 = sst [smem:[#allocation17_spill]] %s3868_s0 }
   0x2   :  { %3882 = sst [smem:[#allocation18_spill]] %s3870_s2 }
   0x3   :  { %3883 = sst [smem:[#allocation19_spill]] %s3872_s4 }
   0x4   :  { %11 = vsyncpa [#allocation3], 0 }
   0x5   :  { %13 = vsyncpa [#allocation3 + $0x1], 0 }
   0x6   :  { %14 = vsyncpa [#allocation6], 0 }
   0x7   :  { %16 = vsyncpa [#allocation6 + $0x1], 0 }
   0x8   :  { %17 = vsyncpa [#allocation9], 0 }
   0x9   :  { %18 = vsyncpa [#allocation4], 0 }
   0xa   :  { %20 = vsyncpa [#allocation4 + $0x1], 0  ;;  %s3333_s21 = smov 0   ;;  %s3335_s22 = smov 0  }
   0xb   :  { %s3337_s23 = smov 0   ;;  %s3339_s24 = smov 0  }
   0xc LB: > { %s3354_s25 = sadd.s32 4294967295, %s3263_s24   ;;  %s2385_s26 = sadd.s32 4294967294, %s3263_s24   ;;  %s3263_s24 = sphi %s3339_s24, %s3913_s24   ;;  %s3259_s23 = sphi %s3337_s23, %s3912_s23   ;;  %s3255_s22 = sphi %s3335_s22, %s3911_s22   ;;  %s3251_s21 = sphi %s3333_s21, %s3910_s21  }
   0xd   : > { %p46_p0 = scmp.ne.s32.totalorder %s3255_s22, %s3251_s21  ;;  %p3875_p1 = scmp.eq.s32.totalorder %s3354_s25, 0 }
   0xe   : > { %p186_p3 = scmp.eq.s32.totalorder %s2385_s26, 1  ;;  %p2386_p5 = scmp.ge.s32.totalorder %s3263_s24, 1 }
   0xf   : > { %p3363_p4 = por %p3875_p1, %p46_p0  ;;  %p193_p7 = scmp.lt.s32.totalorder %s3263_s24, 3 }
  0x10   : > { %p3368_p6 = por %p186_p3, %p46_p0  ;;  %s3265_s30 = smov [#allocation7]  }
  0x11   : > { %s3884_s27 = scalar_select %p3363_p4, 1, 0 }
  0x12   : > { %s3885_s28 = scalar_select %p3368_p6, 1, 0 }
  0x13   : > { %p3373_p8 = pnand %p2386_p5, %p193_p7  ;;  %s205_s7 = sshll.u32 %s3265_s30, 4  ;;  %s3377_s7 = int_to_ptr.vmem [resolvable:$true] %s205_s7 }
  0x14   : > { %s3266_s9 = smov [#allocation8]   ;;  %s3888_s2 = sld [smem:[#allocation18_spill]] }
  0x15   : > { %s3886_s29 = scalar_select %p3373_p8, 1, 0 }
  0x16   : > { %p2844_p9 = pneg %p3373_p8  ;;  %s221_s10 = sshll.u32 %s3266_s9, 4  ;;  %s3388_s10 = int_to_ptr.vmem [resolvable:$true] %s221_s10 }
  0x18   : > { %p3384_p11 = pnand %p2844_p9, %p3875_p1 }
  0x1a   : > { %s3069_s13 = scalar_lea.hbm %s3888_s2, 512  ;;  %p3071_p13 = pneg %p3384_p11 }
  0x1b   : > { %p3070_p12 = scmp.ne.s32.totalorder %s3888_s2, %s3069_s13  ;;  %p3076_p5 = scmp.lt.u32.totalorder %s3069_s13, %s3888_s2 }
  0x1d   : > { %p3072_p0 = pnand %p3071_p13, %p3070_p12 }
  0x1f   : > { %p3073_p3 = pneg %p3072_p0 }
  0x21   : > { %p3078_p7 = pnand %p3076_p5, %p3073_p3 }
  0x23   : > { %3081 = shalt.err (!%p3078_p7)
}
  0x24   : > { %s3082_s18 = scalar_lea.vmem %s3377_s7, 512  ;;  %p3090_p2 = scmp.lt.s32.totalorder %s3377_s7, %s3377_s7 }
  0x25   : > { %p3083_p9 = scmp.ne.s32.totalorder %s3377_s7, %s3082_s18  ;;  %p3091_p12 = scmp.lt.s32.totalorder %s3082_s18, %s3082_s18 }
  0x27   : > { %p3085_p10 = pnand %p3083_p9, %p3071_p13  ;;  %p3092_p0 = por %p3091_p12, %p3090_p2 }
  0x29   : > { %p3086_p1 = pneg %p3085_p10 }
  0x2b   : > { %p3093_p6 = pnand %p3092_p0, %p3086_p1 }
  0x2d   : > { %3096 = shalt.err (!%p3093_p6)
}
  0x2e   : > { %s3876_s19 = smov 128   ;;  %s3877_s20 = smov 8  }
  0x2f   : > { %2847 = dma.hbm_to_vmem [thread:$0]  (!%p3384_p11), %s3888_s2, 512, %s3377_s7, [#allocation6], %s3876_s19, %s3876_s19, %s3877_s20  }
  0x30   : > { %s3889_s4 = sld [smem:[#allocation19_spill]] }
  0x36   : > { %s3097_s12 = scalar_lea.hbm %s3889_s4, 512 }
  0x37   : > { %p3098_p1 = scmp.ne.s32.totalorder %s3889_s4, %s3097_s12  ;;  %p3104_p10 = scmp.lt.u32.totalorder %s3097_s12, %s3889_s4 }
  0x39   : > { %p3100_p2 = pnand %p3098_p1, %p3071_p13 }
  0x3b   : > { %p3101_p6 = pneg %p3100_p2 }
  0x3d   : > { %p3106_p3 = pnand %p3104_p10, %p3101_p6 }
  0x3f   : > { %3109 = shalt.err (!%p3106_p3)
}
  0x40   : > { %s3110_s7 = scalar_lea.vmem %s3388_s10, 512  ;;  %p3118_p12 = scmp.lt.s32.totalorder %s3388_s10, %s3388_s10 }
  0x41   : > { %p3111_p5 = scmp.ne.s32.totalorder %s3388_s10, %s3110_s7  ;;  %p3119_p0 = scmp.lt.s32.totalorder %s3110_s7, %s3110_s7 }
  0x43   : > { %p3113_p7 = pnand %p3111_p5, %p3071_p13  ;;  %p3120_p1 = por %p3119_p0, %p3118_p12 }
  0x45   : > { %p3114_p9 = pneg %p3113_p7 }
  0x47   : > { %p3121_p2 = pnand %p3120_p1, %p3114_p9 }
  0x49   : > { %3124 = shalt.err (!%p3121_p2)
}
  0x4a   : > { %2850 = dma.hbm_to_vmem [thread:$0]  (!%p3384_p11), %s3889_s4, 512, %s3388_s10, [#allocation9], %s3876_s19, %s3876_s19, %s3877_s20  }
  0x4b   : > { %s3449_s8 = sadd.s32 1, %s3263_s24   ;;  %s33_s26 = sadd.s32 1, %s3259_s23 }
  0x4c   : > { %s30_s30 = ssub.s32 %s3263_s24, %s3449_s8  ;;  %p40_p13 = scmp.ne.s32.totalorder %s3259_s23, %s3255_s22 }
  0x4d   : > { %p31_p6 = scmp.eq.s32.totalorder %s30_s30, 0  ;;  %p41_p10 = scmp.eq.s32.totalorder %s3263_s24, 0 }
  0x4e   : > { %p3890_p3 = scmp.eq.s32.totalorder %s3354_s25, 1  ;;  %p2864_p7 = scmp.lt.s32.totalorder %s3263_s24, 2 }
  0x4f   : > { %s3465_s11 = scalar_select %p31_p6, %s3259_s23, %s33_s26  }
  0x50   : > { %p3459_p5 = por %p3890_p3, %p40_p13  ;;  %p42_p9 = por %p41_p10, %p40_p13 }
  0x51   : > { %3892 = sst [smem:[#allocation16_spill]] %s3465_s11  ;;  %s3468_s12 = sand.u32 1, %s3259_s23  }
  0x52   : > { %s3891_s9 = scalar_select %p3459_p5, 1, 0 }
  0x53   : > { %s2390_s10 = sshll.u32 %s3468_s12, 4  ;;  %s2469_s13 = sshll.u32 %s3263_s24, 8 }
  0x54   : > { %s3893_s0 = sld [smem:[#allocation17_spill]]  ;;  %s242_s7 = scalar_lea.vmem [#allocation2], %s2390_s10 }
  0x55   : > { %s249_s17 = sshll.u32 %s242_s7, 4  ;;  %p3479_p11 = pnand %p2864_p7, %p42_p9  ;;  %s3477_s17 = int_to_ptr.vmem [resolvable:$true] %s249_s17 }
  0x56   : > { %s2393_s30 = sshll.u32 %s3468_s12, 3  ;;  %s239_s19 = scalar_lea.sflag [#allocation3], %s3468_s12 }
  0x57   : > { %p3127_p0 = pneg %p3479_p11 }
  0x5a   : > { %s3475_s16 = scalar_lea.hbm %s3893_s0, %s2469_s13  ;;  %s3130_s15 = scalar_lea.hbm %s3893_s0, 512 }
  0x5b   : > { %s3125_s14 = scalar_lea.hbm %s3475_s16, 256  ;;  %p3131_p13 = scmp.lt.u32.totalorder %s3475_s16, %s3893_s0 }
  0x5c   : > { %p3126_p12 = scmp.ne.s32.totalorder %s3475_s16, %s3125_s14  ;;  %p3132_p6 = scmp.lt.u32.totalorder %s3130_s15, %s3125_s14 }
  0x5d   : > { %p3134_p3 = scmp.lt.u32.totalorder %s3125_s14, %s3475_s16 }
  0x5e   : > { %p3128_p1 = pnand %p3127_p0, %p3126_p12  ;;  %p3133_p10 = por %p3132_p6, %p3131_p13 }
  0x60   : > { %p3129_p2 = pneg %p3128_p1  ;;  %p3135_p7 = por %p3134_p3, %p3133_p10 }
  0x62   : > { %p3136_p9 = pnand %p3135_p7, %p3129_p2 }
  0x64   : > { %3139 = shalt.err (!%p3136_p9)
}
  0x65   : > { %s3140_s26 = scalar_lea.vmem %s3477_s17, 256  ;;  %s3269_s10 = smov [#allocation2]  }
  0x66   : > { %p3141_p12 = scmp.ne.s32.totalorder %s3477_s17, %s3140_s26  ;;  %s3145_s13 = sshll.u32 %s3269_s10, 4  ;;  %s3146_s13 = int_to_ptr.vmem [resolvable:$false] %s3145_s13 }
  0x67   : > { %s3147_s20 = scalar_lea.vmem %s3146_s13, 512  ;;  %p3148_p4 = scmp.lt.s32.totalorder %s3477_s17, %s3146_s13 }
  0x68   : > { %p3143_p1 = pnand %p3141_p12, %p3127_p0  ;;  %p3149_p13 = scmp.lt.s32.totalorder %s3147_s20, %s3140_s26 }
  0x6a   : > { %p3144_p5 = pneg %p3143_p1  ;;  %p3150_p6 = por %p3149_p13, %p3148_p4 }
  0x6c   : > { %p3151_p10 = pnand %p3150_p6, %p3144_p5 }
  0x6e   : > { %3154 = shalt.err (!%p3151_p10)
}
  0x6f   : > { %s3895_s14 = smov 8   ;;  %s3896_s15 = smov 128  }
  0x70   : > { %2854 = dma.hbm_to_vmem [thread:$0]  (!%p3479_p11), %s3475_s16, 256, %s3477_s17, %s239_s19, %s3896_s15, %s3896_s15, %s3895_s14  }
  0x71   : > { %s2394_s7 = sshll.u32 %s3263_s24, 7  ;;  %s263_s20 = scalar_lea.vmem [#allocation5], %s2393_s30 }
  0x72   : > { %s3520_s13 = scalar_lea.hbm %s3869_s1, %s2394_s7  ;;  %s270_s0 = sshll.u32 %s263_s20, 4  ;;  %s271_s0 = int_to_ptr.vmem [resolvable:$true] %s270_s0 }
  0x73   : > { %s3897_s2 = sand.u32 1, %s3263_s24   ;;  %s3155_s11 = scalar_lea.hbm %s3520_s13, 128 }
  0x74   : > { %s260_s4 = scalar_lea.sflag [#allocation6], %s3897_s2  ;;  %p3156_p4 = scmp.ne.s32.totalorder %s3520_s13, %s3155_s11 }
  0x75   : > { %s3160_s17 = scalar_lea.hbm %s3869_s1, 256  ;;  %p3161_p3 = scmp.lt.u32.totalorder %s3520_s13, %s3869_s1 }
  0x76   : > { %p3158_p5 = pnand %p3156_p4, %p3127_p0  ;;  %p3162_p7 = scmp.lt.u32.totalorder %s3160_s17, %s3155_s11 }
  0x77   : > { %p3164_p12 = scmp.lt.u32.totalorder %s3155_s11, %s3520_s13 }
  0x78   : > { %p3159_p2 = pneg %p3158_p5  ;;  %p3163_p9 = por %p3162_p7, %p3161_p3 }
  0x7a   : > { %p3165_p1 = por %p3164_p12, %p3163_p9 }
  0x7c   : > { %p3166_p13 = pnand %p3165_p1, %p3159_p2 }
  0x7e   : > { %3169 = shalt.err (!%p3166_p13)
}
  0x7f   : > { %s3170_s2 = scalar_lea.vmem %s271_s0, 128  ;;  %s3270_s30 = smov [#allocation5]  }
  0x80   : > { %p3171_p6 = scmp.ne.s32.totalorder %s271_s0, %s3170_s2  ;;  %s3175_s15 = sshll.u32 %s3270_s30, 4  ;;  %s3176_s15 = int_to_ptr.vmem [resolvable:$false] %s3175_s15 }
  0x81   : > { %s3177_s7 = scalar_lea.vmem %s3176_s15, 256  ;;  %p3178_p5 = scmp.lt.s32.totalorder %s271_s0, %s3176_s15 }
  0x82   : > { %p3173_p10 = pnand %p3171_p6, %p3127_p0  ;;  %p3179_p8 = scmp.lt.s32.totalorder %s3177_s7, %s3170_s2 }
  0x84   : > { %p3174_p4 = pneg %p3173_p10  ;;  %p3180_p3 = por %p3179_p8, %p3178_p5 }
  0x86   : > { %p3181_p7 = pnand %p3180_p3, %p3174_p4 }
  0x88   : > { %3184 = shalt.err (!%p3181_p7)
}
  0x89   : > { %2857 = dma.hbm_to_vmem [thread:$0]  (!%p3479_p11), %s3520_s13, 128, %s271_s0, %s260_s4  }
  0x8a   : > { %p3898_p2 = scmp.ne.s32.totalorder %s3886_s29, 0 }
  0x8b   : > { %s3548_s11 = sand.u32 (!%p3898_p2), 1, %s3255_s22   ;;  %p3899_p8 = scmp.ne.s32.totalorder (!%p3898_p2), %s3884_s27, 0 }
  0x8c   : > { %279 = sbr.rel (%p3898_p2) target bundleno = 4653 (0x122d), region = 44  ;;  %s2396_s10 = sshll.u32 (!%p3898_p2), %s3548_s11, 4 }
  0x8d   : > { %s282_s26 = scalar_lea.sflag (!%p3898_p2), [#allocation3], %s3548_s11  ;;  %s3554_s20 = scalar_lea.vmem (!%p3898_p2), [#allocation2], %s2396_s10 }
  0x93   : > { %3230 = dma.done.wait (%p3899_p8), %s282_s26, 256  }
  0x94   : > { %3232 = vsyncadd (%p3899_p8), %s282_s26, 4294967040  ;;  %s290_s0 = sand.u32 1, %s3354_s25   ;;  %s2397_s4 = sshll.u32 %s3548_s11, 3 }
  0x95   : > { %s291_s29 = scalar_lea.sflag [#allocation6], %s290_s0  ;;  %s3562_s18 = scalar_lea.vmem [#allocation5], %s2397_s4 }
  0x96   : > { %3234 = dma.done.wait (%p3899_p8), %s291_s29, 128  }
  0x97   : > { %3236 = vsyncadd (%p3899_p8), %s291_s29, 4294967168  ;;  %p3900_p11 = scmp.eq.s32.totalorder %s3354_s25, 0 }
  0x99   : > { %3238 = dma.done.wait (%p3900_p11), [#allocation6], 512   ;;  %p3901_p0 = pmov %p3900_p11 }
  0x9b   : > { %3240 = vsyncadd (%p3901_p0), [#allocation6], 4294966784  ;;  %p3902_p9 = pmov %p3901_p0 }
  0x9c   : > { %p3903_p12 = pmov %p3901_p0 }
  0x9d   : > { %3242 = dma.done.wait (%p3902_p9), [#allocation9], 512  }
  0x9e   : > { %3244 = vsyncadd (%p3903_p12), [#allocation9], 4294966784  ;;  %v3271_v0 = vmov 0.0|0.0   ;;  %vm3272_vm0 = vmmov 0   ;;  %v3273_v1 = vmov 0.0   ;;  %v432_v2 = vld [vmem:[#allocation8] sm:$0xff] }
  0x9f   : > { %2744 = vmatprep.subr.bf16.mxu1 %v3271_v0  ;;  %2583 = vmatprep.mubr.msk.f32.mxu1 %vm3272_vm0, %v3273_v1  ;;  %v433_v3 = vld [vmem:[#allocation8 + $0x8] sm:$0xff]  ;;  %v434_v4 = vld [vmem:[#allocation8 + $0x10] sm:$0xff]  ;;  %v435_v6 = vld [vmem:[#allocation8 + $0x18] sm:$0xff]  ;;  %vm350_vm1 = vcmask 261120   ;;  %vm526_vm2 = vcmask 31744   ;;  %s3274_s17 = smov 124  }
  0xa0   : > { %v2745_v5 = vpack.c.bf16 %v433_v3, %v432_v2  ;;  %v336_v7 = vld [vmem:[%s3554_s20] sm:$0xff]  ;;  %v340_v9 = vld [vmem:[#allocation7 + $0x8] sm:$0xff]  ;;  %v2748_v11 = vpack.c.bf16 %v435_v6, %v434_v4  ;;  %v342_v13 = vld [vmem:[#allocation7 + $0x18] sm:$0xff]  ;;  %vm617_vm4 = vcmask 195584   ;;  %s3275_s12 = smov 96   ;;  %s3276_s14 = smov 92  }
  0xa1   : > { %v339_v8 = vld [vmem:[#allocation7] sm:$0xff]  ;;  %v341_v10 = vld [vmem:[#allocation7 + $0x10] sm:$0xff]  ;;  %2572 = vmatprep.mubr.msk.f32.mxu0 %vm350_vm1, %v336_v7  ;;  %v337_v15 = vld [vmem:[%s3554_s20 + $0x8] sm:$0xff]  ;;  %s3277_s2 = smov 120   ;;  %s3278_s30 = smov 88   ;;  %vm2237_vm5 = vcmask 64512  }
  0xa2   : > { %2746 = vmatpush3.bf16.msra.mxu1 %v2745_v5  ;;  %v2736_v12 = vpack.c.bf16 %v340_v9, %v339_v8  ;;  %v2740_v14 = vpack.c.bf16 %v342_v13, %v341_v10  ;;  %v338_v16 = vld [vmem:[%s3562_s18] sm:$0xff]  ;;  %vm3597_vm3 = vmpackc.low %vm526_vm2, %vm526_vm2  ;;  %s3279_s15 = smov 116   ;;  %s3280_s7 = smov 84   ;;  %vm2240_vm6 = vcmask 97280   ;;  %vm2243_vm7 = vcmask 130048  }
  0xa3   : > { %2747 = vmatprep.subr.bf16.mxu1 %v3271_v0  ;;  %v2404_v19 = vld [vmem:[%s3873_s5] ss:$0 sm:$0xff]  ;;  %s3281_s26 = smov 112   ;;  %s3282_s20 = smov 80   ;;  %vm2246_vm8 = vcmask 162816   ;;  %vm2251_vm9 = vcmask 228352  }
  0xa4   : > { %2737 = vmatprep.subr.bf16.mxu0 %v2736_v12  ;;  %v2401_v20 = vld [vmem:[%s3871_s3] ss:$0 sm:$0xff]  ;;  %s3283_s0 = smov 108   ;;  %s3284_s4 = smov 76  }
  0xa5   : > { %2739 = vmatpush3.bf16.msra.mxu0 %v2736_v12  ;;  %s3285_s29 = smov 104   ;;  %s3286_s18 = smov 72  }
  0xa6   : > { %2749 = vmatpush3.bf16.msra.mxu1 %v2748_v11  ;;  %2741 = vmatprep.subr.bf16.mxu0 %v2740_v14  ;;  %s3287_s27 = smov 100   ;;  %s3288_s13 = smov 68  }
  0xa7   : > { %s3289_s19 = smov 4   ;;  %s3290_s16 = smov 8  }
  0xa8   : > { %p3906_p13 = scmp.ne.s32.totalorder %s3891_s9, 0 }
  0xa9   : > { %2584 = vmatmul.mubr.msk.f32.vlgmr.msra.gmra.mrb[0].mxu1 %vm350_vm1, %v336_v7  ;;  %2743 = vmatpush3.bf16.msra.mxu0 %v2740_v14 }
  0xaa   : > { %2586 = vmatprep.mubr.msk.f32.mxu1 %vm3272_vm0, %v3273_v1 }
  0xac   : > { %2573 = vmatmul.mubr.msk.f32.vlgmr.msra.gmra.mrb[0].mxu0 %vm350_vm1, %v337_v15 }
  0xad   : > { %2587 = vmatmul.mubr.msk.f32.gmra.mrb[2].mxu1 %vm350_vm1, %v337_v15 }
  0xae   : > { %2589 = vmatprep.mubr.msk.f32.mxu1 %vm3272_vm0, %v3273_v1 }
  0xb1   : > { %2590 = vmatmul.mubr.msk.f32.gmra.mrb[4].mxu1 %vm350_vm1, %v338_v16 }
 0x17c   : > { %v512_v17 = vpop.f32.mrb[0].mxu1 }
 0x17d   : > { %v2585_v18 = vpop.f32.mrb[1].mxu1  ;;  %v513_v24 = vadd.f32 %v2404_v19, %v512_v17 }
 0x17f   : > { %v2574_v21 = vpop.f32.mrb[0].mxu0 }
 0x180   : > { %v517_v22 = vpop.f32.mrb[2].mxu1  ;;  %v423_v23 = vpop.f32.mrb[1].mxu0  ;;  %v3601_v29 = vadd.f32 %v2574_v21, %v2401_v20 }
 0x181   : > { %v518_v25 = vadd.f32 %v2404_v19, %v517_v22  ;;  %v2588_v26 = vpop.f32.mrb[3].mxu1  ;;  %v3593_v27 = vadd.f32 %v2401_v20, %v423_v23 }
 0x183   : > { %v3603_v30 = vpack.i.bf16 %v518_v25, %v513_v24  ;;  %v2750_v31 = vpack.c.bf16 %v518_v25, %v513_v24  ;;  %730 = vrot.lane.b32.xlu1 %v3593_v27, %s3274_s17  ;;  %2598 = vmatprep.mubr.msk.f32.mxu0 %vm526_vm2, %v3593_v27 }
 0x184   : > { %v522_v32 = vpop.f32.mrb[4].mxu1 }
 0x185   : > { %2931 = vrot.lane.b32.xlu0 %v3603_v30, %s3274_s17  ;;  %2752 = vmatprep.subr.msk.bf16.mxu0 %vm3597_vm3, %v2750_v31  ;;  %v3611_v33 = vadd.f32 %v2404_v19, %v522_v32  ;;  %v2591_v34 = vpop.f32.mrb[5].mxu1 }
 0x186   : > { %2755 = vmatpush3.bf16.xpose.msk.msra.mxu0 %vm3597_vm3, %v2750_v31 }
 0x187   : > { %2596 = vmatprep.subr.msk.mxu0 %vm526_vm2, %v3611_v33  ;;  %732 = vrot.lane.b32.xlu1 %v3601_v29, %s3274_s17 }
 0x189   : > { %738 = vrot.lane.b32.xlu0 %v3611_v33, %s3274_s17  ;;  %s3291_s17 = smov 12  }
 0x18e   : > { %2597 = vmatpush3.xpose.msk.msra.mxu0 %vm526_vm2, %v3611_v33 }
 0x191   : > { %2599 = vmatmul.mubr.msk.f32.vlgmr.msra.gmra.mrb[2].mxu0 %vm526_vm2, %v3601_v29 }
 0x1f5   : > { %v731_v35 = vpop.permute.xlu1 %730 }
 0x1f6   : > { %2616 = vmatprep.mubr.msk.f32.mxu0 %vm526_vm2, %v731_v35 }
 0x1f7   : > { %v2932_v36 = vpop.permute.xlu0 %2931 }
 0x1f8   : > { %v2934_v37 = vunpack.i.h.bf16 %v2932_v36  ;;  %v2933_v38 = vunpack.i.l.bf16 %v2932_v36 }
 0x1f9   : > { %v733_v41 = vpop.permute.xlu1 %732 }
 0x1fa   : > { %v2760_v39 = vpack.c.bf16 %v2934_v37, %v2933_v38 }
 0x1fb   : > { %v739_v40 = vpop.permute.xlu0 %738 }
 0x1fc   : > { %2762 = vmatprep.subr.msk.bf16.mxu0 %vm3597_vm3, %v2760_v39 }
 0x1fd   : > { %2765 = vmatpush3.bf16.xpose.msk.msra.mxu0 %vm3597_vm3, %v2760_v39 }
 0x1fe   : > { %2614 = vmatprep.subr.msk.mxu0 %vm526_vm2, %v739_v40 }
 0x205   : > { %2615 = vmatpush3.xpose.msk.msra.mxu0 %vm526_vm2, %v739_v40 }
 0x208   : > { %2617 = vmatmul.mubr.msk.f32.vlgmr.msra.gmra.mrb[4].mxu0 %vm526_vm2, %v733_v41 }
 0x264   : > { %v2600_v42 = vpop.f32.mrb[2].mxu0 }
 0x265   : > { %v608_v43 = vpop.f32.mrb[3].mxu0  ;;  %v621_v44 = vsel %vm617_vm4, %v2600_v42, -inf }
 0x266   : > { %622 = vmax.xlane.f32.xlu1 %v621_v44  ;;  %v618_v45 = vsel %vm617_vm4, %v608_v43, -inf }
 0x267   : > { %619 = vmax.xlane.f32.xlu0 %v618_v45 }
 0x277   : > { %2936 = vrot.lane.b32.xlu1 %v3603_v30, %s3275_s12 }
 0x27b   : > { %2941 = vrot.lane.b32.xlu1 %v3603_v30, %s3276_s14 }
 0x2db   : > { %v2618_v46 = vpop.f32.mrb[4].mxu0 }
 0x2dc   : > { %v816_v47 = vpop.f32.mrb[5].mxu0  ;;  %v828_v49 = vsel %vm617_vm4, %v2618_v46, -inf }
 0x2dd   : > { %v825_v48 = vsel %vm617_vm4, %v816_v47, -inf }
 0x2de   : > { %826 = vmax.xlane.f32.xlu0 %v825_v48 }
 0x2e2   : > { %829 = vmax.xlane.f32.xlu0 %v828_v49 }
 0x2f3   : > { %v623_v50 = vpop.xlane.xlu1 %622 }
 0x2f4   : > { %v620_v51 = vpop.xlane.xlu0 %619  ;;  %v625_v58 = vsub.f32 %v2600_v42, %v623_v50 }
 0x2f5   : > { %v624_v52 = vsub.f32 %v608_v43, %v620_v51 }
 0x2f6   : > { %v628_v61 = vmul.f32 1.442695, %v625_v58 }
 0x2f7   : > { %v626_v53 = vmul.f32 1.442695, %v624_v52  ;;  %v2937_v54 = vpop.permute.xlu1 %2936 }
 0x2f8   : > { %v2939_v55 = vunpack.i.h.bf16 %v2937_v54  ;;  %v2938_v56 = vunpack.i.l.bf16 %v2937_v54  ;;  %644 = vrot.lane.b32.xlu0 %v3611_v33, %s3275_s12  ;;  %s3292_s12 = smov 16  }
 0x2f9   : > { %3005 = vpow2.f32 %v626_v53 }
 0x2fa   : > { %v2756_v57 = vpack.c.bf16 %v2939_v55, %v2938_v56  ;;  %3007 = vpow2.f32 %v628_v61 }
 0x2fb   : > { %v2942_v2 = vpop.permute.xlu1 %2941 }
 0x2fc   : > { %2757 = vmatprep.subr.bf16.mxu1 %v2756_v57  ;;  %v2944_v5 = vunpack.i.h.bf16 %v2942_v2  ;;  %v2943_v6 = vunpack.i.l.bf16 %v2942_v2 }
 0x2fd   : > { %2759 = vmatpush3.bf16.msra.mxu1 %v2756_v57 }
 0x2fe   : > { %v2766_v10 = vpack.c.bf16 %v2944_v5, %v2943_v6 }
 0x303   : > { %v3006_v59 = vpop.eup %3005 }
 0x304   : > { %v630_v60 = vsel %vm617_vm4, %v3006_v59, 0.0  ;;  %v3008_v62 = vpop.eup %3007 }
 0x305   : > { %631 = vadd.xlane.f32.xlu1 %v630_v60  ;;  %v633_v63 = vsel %vm617_vm4, %v3008_v62, 0.0 }
 0x316   : > { %851 = vrot.lane.b32.xlu1 %v3611_v33, %s3276_s14  ;;  %s3293_s14 = smov 20  }
 0x317   : > { %634 = vadd.xlane.f32.xlu0 %v633_v63 }
 0x36b   : > { %v827_v0 = vpop.xlane.xlu0 %826 }
 0x36c   : > { %v831_v1 = vsub.f32 %v816_v47, %v827_v0 }
 0x36e   : > { %v833_v3 = vmul.f32 1.442695, %v831_v1 }
 0x36f   : > { %v830_v4 = vpop.xlane.xlu0 %829 }
 0x370   : > { %3009 = vpow2.f32 %v833_v3  ;;  %v832_v7 = vsub.f32 %v2618_v46, %v830_v4 }
 0x372   : > { %v835_v8 = vmul.f32 1.442695, %v832_v7 }
 0x373   : > { %v645_v9 = vpop.permute.xlu0 %644 }
 0x374   : > { %3011 = vpow2.f32 %v835_v8  ;;  %2605 = vmatprep.subr.mxu1 %v645_v9 }
 0x375   : > { %2606 = vmatpush3.msra.mxu1 %v645_v9 }
 0x376   : > { %2767 = vmatprep.subr.bf16.mxu1 %v2766_v10 }
 0x37a   : > { %v3010_v11 = vpop.eup %3009 }
 0x37b   : > { %v837_v12 = vsel %vm617_vm4, %v3010_v11, 0.0 }
 0x37c   : > { %838 = vadd.xlane.f32.xlu1 %v837_v12 }
 0x37e   : > { %v3012_v13 = vpop.eup %3011 }
 0x37f   : > { %v840_v14 = vsel %vm617_vm4, %v3012_v13, 0.0 }
 0x380   : > { %841 = vadd.xlane.f32.xlu0 %v840_v14 }
 0x38d   : > { %945 = vrot.lane.b32.xlu1 %v3611_v33, %s3277_s2 }
 0x391   : > { %939 = vrot.lane.b32.xlu1 %v3601_v29, %s3277_s2 }
 0x392   : > { %v632_v15 = vpop.xlane.xlu1 %631 }
 0x393   : > { %3013 = vrcp.f32 %v632_v15 }
 0x396   : > { %2946 = vrot.lane.b32.xlu0 %v3603_v30, %s3277_s2  ;;  %v852_v21 = vpop.permute.xlu1 %851 }
 0x39a   : > { %937 = vrot.lane.b32.xlu0 %v3593_v27, %s3277_s2  ;;  %s3294_s2 = smov 24  }
 0x39d   : > { %v3014_v16 = vpop.eup %3013 }
 0x39e   : > { %v638_v17 = vmul.f32 %v3014_v16, %v3006_v59 }
 0x3a0   : > { %2607 = vmatprep.mubr.msk.f32.mxu1 %vm617_vm4, %v638_v17 }
 0x3a4   : > { %v635_v18 = vpop.xlane.xlu0 %634 }
 0x3a5   : > { %3015 = vrcp.f32 %v635_v18 }
 0x3af   : > { %v3016_v19 = vpop.eup %3015 }
 0x3b0   : > { %v639_v20 = vmul.f32 %v3016_v19, %v3008_v62 }
 0x3b2   : > { %2608 = vmatmul.mubr.msk.f32.vlgmr.msra.gmra.mrb[6].mxu1 %vm617_vm4, %v639_v20 }
 0x3b3   : > { %2769 = vmatpush3.bf16.msra.mxu1 %v2766_v10 }
 0x3b4   : > { %2623 = vmatprep.subr.mxu1 %v852_v21 }
 0x3b7   : > { %2624 = vmatpush3.msra.mxu1 %v852_v21 }
 0x409   : > { %v839_v22 = vpop.xlane.xlu1 %838 }
 0x40a   : > { %3017 = vrcp.f32 %v839_v22 }
 0x40d   : > { %v842_v23 = vpop.xlane.xlu0 %841  ;;  %v946_v38 = vpop.permute.xlu1 %945 }
 0x40e   : > { %3019 = vrcp.f32 %v842_v23 }
 0x411   : > { %v2947_v24 = vpop.permute.xlu0 %2946  ;;  %v940_v39 = vpop.permute.xlu1 %939 }
 0x412   : > { %v2949_v25 = vunpack.i.h.bf16 %v2947_v24  ;;  %v2948_v26 = vunpack.i.l.bf16 %v2947_v24 }
 0x414   : > { %v3018_v31 = vpop.eup %3017  ;;  %v2770_v32 = vpack.c.bf16 %v2949_v25, %v2948_v26 }
 0x415   : > { %v845_v34 = vmul.f32 %v3018_v31, %v3010_v11  ;;  %v938_v37 = vpop.permute.xlu0 %937 }
 0x416   : > { %2772 = vmatprep.subr.msk.bf16.mxu1 %vm3597_vm3, %v2770_v32 }
 0x417   : > { %2625 = vmatprep.mubr.msk.f32.mxu1 %vm617_vm4, %v845_v34 }
 0x418   : > { %v3020_v35 = vpop.eup %3019 }
 0x419   : > { %v846_v36 = vmul.f32 %v3020_v35, %v3012_v13 }
 0x41b   : > { %2626 = vmatmul.mubr.msk.f32.vlgmr.msra.gmra.mrb[8].mxu1 %vm617_vm4, %v846_v36 }
 0x41c   : > { %2775 = vmatpush3.bf16.xpose.msk.msra.mxu1 %vm3597_vm3, %v2770_v32  ;;  %2634 = vmatprep.mubr.msk.f32.mxu1 %vm526_vm2, %v938_v37 }
 0x41d   : > { %2632 = vmatprep.subr.msk.mxu1 %vm526_vm2, %v946_v38 }
 0x424   : > { %2633 = vmatpush3.xpose.msk.msra.mxu1 %vm526_vm2, %v946_v38 }
 0x427   : > { %2635 = vmatmul.mubr.msk.f32.vlgmr.msra.gmra.mrb[10].mxu1 %vm526_vm2, %v940_v39 }
 0x485   : > { %v3659_v40 = vpop.f32.mrb[6].mxu1 }
 0x486   : > { %v3661_v41 = vpop.f32.mrb[7].mxu1 }
 0x4ee   : > { %v3663_v42 = vpop.f32.mrb[8].mxu1 }
 0x4ef   : > { %v3665_v43 = vpop.f32.mrb[9].mxu1 }
 0x4fa   : > { %v2636_v44 = vpop.f32.mrb[10].mxu1 }
 0x4fb   : > { %v1023_v45 = vpop.f32.mrb[11].mxu1  ;;  %v1035_v46 = vsel %vm617_vm4, %v2636_v44, -inf }
 0x4fc   : > { %1036 = vmax.xlane.f32.xlu1 %v1035_v46  ;;  %v1032_v47 = vsel %vm617_vm4, %v1023_v45, -inf }
 0x4fd   : > { %1033 = vmax.xlane.f32.xlu0 %v1032_v47 }
 0x50d   : > { %2951 = vrot.lane.b32.xlu1 %v3603_v30, %s3278_s30 }
 0x511   : > { %2956 = vrot.lane.b32.xlu1 %v3603_v30, %s3279_s15 }
 0x515   : > { %1152 = vrot.lane.b32.xlu1 %v3611_v33, %s3279_s15 }
 0x519   : > { %1146 = vrot.lane.b32.xlu1 %v3601_v29, %s3279_s15 }
 0x589   : > { %v1037_v48 = vpop.xlane.xlu1 %1036 }
 0x58a   : > { %v1039_v49 = vsub.f32 %v2636_v44, %v1037_v48  ;;  %v1034_v50 = vpop.xlane.xlu0 %1033 }
 0x58b   : > { %v1038_v51 = vsub.f32 %v1023_v45, %v1034_v50 }
 0x58c   : > { %v1042_v52 = vmul.f32 1.442695, %v1039_v49 }
 0x58d   : > { %v1040_v53 = vmul.f32 1.442695, %v1038_v51  ;;  %v2952_v54 = vpop.permute.xlu1 %2951 }
 0x58e   : > { %3021 = vpow2.f32 %v1042_v52  ;;  %v2954_v55 = vunpack.i.h.bf16 %v2952_v54  ;;  %v2953_v56 = vunpack.i.l.bf16 %v2952_v54 }
 0x58f   : > { %3023 = vpow2.f32 %v1040_v53 }
 0x590   : > { %v2776_v57 = vpack.c.bf16 %v2954_v55, %v2953_v56 }
 0x591   : > { %v2957_v63 = vpop.permute.xlu1 %2956 }
 0x592   : > { %2777 = vmatprep.subr.bf16.mxu0 %v2776_v57  ;;  %v2959_v1 = vunpack.i.h.bf16 %v2957_v63  ;;  %v2958_v2 = vunpack.i.l.bf16 %v2957_v63 }
 0x593   : > { %2779 = vmatpush3.bf16.msra.mxu0 %v2776_v57 }
 0x594   : > { %v2780_v4 = vpack.c.bf16 %v2959_v1, %v2958_v2 }
 0x595   : > { %v1153_v10 = vpop.permute.xlu1 %1152 }
 0x598   : > { %v3022_v58 = vpop.eup %3021 }
 0x599   : > { %v1047_v59 = vsel %vm617_vm4, %v3022_v58, 0.0  ;;  %v3024_v60 = vpop.eup %3023  ;;  %v1147_v11 = vpop.permute.xlu1 %1146 }
 0x59a   : > { %1048 = vadd.xlane.f32.xlu0 %v1047_v59  ;;  %v1044_v61 = vsel %vm617_vm4, %v3024_v60, 0.0 }
 0x59e   : > { %1045 = vadd.xlane.f32.xlu0 %v1044_v61 }
 0x5b4   : > { %1058 = vrot.lane.b32.xlu0 %v3611_v33, %s3278_s30  ;;  %s3295_s30 = smov 28  }
 0x5b8   : > { %1144 = vrot.lane.b32.xlu0 %v3593_v27, %s3279_s15  ;;  %s335_s15 = scalar_lea.vmem [#allocation10], %s2396_s10 }
 0x627   : > { %v1049_v62 = vpop.xlane.xlu0 %1048 }
 0x628   : > { %3025 = vrcp.f32 %v1049_v62 }
 0x62b   : > { %v1046_v0 = vpop.xlane.xlu0 %1045 }
 0x62c   : > { %3027 = vrcp.f32 %v1046_v0 }
 0x62f   : > { %v1059_v3 = vpop.permute.xlu0 %1058 }
 0x630   : > { %2641 = vmatprep.subr.mxu0 %v1059_v3 }
 0x631   : > { %2642 = vmatpush3.msra.mxu0 %v1059_v3 }
 0x632   : > { %2782 = vmatprep.subr.msk.bf16.mxu0 %vm3597_vm3, %v2780_v4  ;;  %v3026_v5 = vpop.eup %3025 }
 0x633   : > { %v1053_v8 = vmul.f32 %v3026_v5, %v3022_v58  ;;  %v1145_v9 = vpop.permute.xlu0 %1144 }
 0x636   : > { %v3028_v6 = vpop.eup %3027 }
 0x637   : > { %v1052_v7 = vmul.f32 %v3028_v6, %v3024_v60 }
 0x639   : > { %2643 = vmatprep.mubr.msk.f32.mxu0 %vm617_vm4, %v1052_v7 }
 0x63a   : > { %2644 = vmatmul.mubr.msk.f32.vlgmr.msra.gmra.mrb[6].mxu0 %vm617_vm4, %v1053_v8 }
 0x63b   : > { %2785 = vmatpush3.bf16.xpose.msk.msra.mxu0 %vm3597_vm3, %v2780_v4  ;;  %2652 = vmatprep.mubr.msk.f32.mxu0 %vm526_vm2, %v1145_v9 }
 0x63c   : > { %2650 = vmatprep.subr.msk.mxu0 %vm526_vm2, %v1153_v10 }
 0x643   : > { %2651 = vmatpush3.xpose.msk.msra.mxu0 %vm526_vm2, %v1153_v10 }
 0x646   : > { %2653 = vmatmul.mubr.msk.f32.vlgmr.msra.gmra.mrb[8].mxu0 %vm526_vm2, %v1147_v11 }
 0x70d   : > { %v3687_v12 = vpop.f32.mrb[6].mxu0 }
 0x70e   : > { %v3689_v13 = vpop.f32.mrb[7].mxu0 }
 0x719   : > { %v2654_v14 = vpop.f32.mrb[8].mxu0 }
 0x71a   : > { %v1230_v15 = vpop.f32.mrb[9].mxu0  ;;  %v1242_v16 = vsel %vm617_vm4, %v2654_v14, -inf }
 0x71b   : > { %1243 = vmax.xlane.f32.xlu1 %v1242_v16  ;;  %v1239_v17 = vsel %vm617_vm4, %v1230_v15, -inf }
 0x71c   : > { %1240 = vmax.xlane.f32.xlu0 %v1239_v17 }
 0x72c   : > { %2961 = vrot.lane.b32.xlu1 %v3603_v30, %s3280_s7 }
 0x730   : > { %2966 = vrot.lane.b32.xlu1 %v3603_v30, %s3281_s26 }
 0x734   : > { %1359 = vrot.lane.b32.xlu1 %v3611_v33, %s3281_s26 }
 0x738   : > { %1353 = vrot.lane.b32.xlu1 %v3601_v29, %s3281_s26 }
 0x7a8   : > { %v1244_v18 = vpop.xlane.xlu1 %1243 }
 0x7a9   : > { %v1246_v19 = vsub.f32 %v2654_v14, %v1244_v18  ;;  %v1241_v20 = vpop.xlane.xlu0 %1240 }
 0x7aa   : > { %v1245_v21 = vsub.f32 %v1230_v15, %v1241_v20 }
 0x7ab   : > { %v1249_v22 = vmul.f32 1.442695, %v1246_v19 }
 0x7ac   : > { %v1247_v23 = vmul.f32 1.442695, %v1245_v21  ;;  %v2962_v24 = vpop.permute.xlu1 %2961 }
 0x7ad   : > { %3029 = vpow2.f32 %v1249_v22  ;;  %v2964_v25 = vunpack.i.h.bf16 %v2962_v24  ;;  %v2963_v26 = vunpack.i.l.bf16 %v2962_v24 }
 0x7ae   : > { %3031 = vpow2.f32 %v1247_v23 }
 0x7af   : > { %v2786_v31 = vpack.c.bf16 %v2964_v25, %v2963_v26 }
 0x7b0   : > { %v2967_v38 = vpop.permute.xlu1 %2966 }
 0x7b1   : > { %2787 = vmatprep.subr.bf16.mxu1 %v2786_v31  ;;  %v2969_v44 = vunpack.i.h.bf16 %v2967_v38  ;;  %v2968_v45 = vunpack.i.l.bf16 %v2967_v38 }
 0x7b2   : > { %2789 = vmatpush3.bf16.msra.mxu1 %v2786_v31 }
 0x7b3   : > { %v2790_v47 = vpack.c.bf16 %v2969_v44, %v2968_v45 }
 0x7b4   : > { %v1360_v53 = vpop.permute.xlu1 %1359 }
 0x7b7   : > { %v3030_v32 = vpop.eup %3029 }
 0x7b8   : > { %v1254_v34 = vsel %vm617_vm4, %v3030_v32, 0.0  ;;  %v3032_v35 = vpop.eup %3031  ;;  %v1354_v54 = vpop.permute.xlu1 %1353 }
 0x7b9   : > { %1255 = vadd.xlane.f32.xlu0 %v1254_v34  ;;  %v1251_v36 = vsel %vm617_vm4, %v3032_v35, 0.0 }
 0x7bd   : > { %1252 = vadd.xlane.f32.xlu0 %v1251_v36 }
 0x7d3   : > { %1265 = vrot.lane.b32.xlu0 %v3611_v33, %s3280_s7  ;;  %s2270_s7 = sshll.u32 %s335_s15, 4  ;;  %s3815_s7 = int_to_ptr.vmem [resolvable:$true] %s2270_s7 }
 0x7d7   : > { %1351 = vrot.lane.b32.xlu0 %v3593_v27, %s3281_s26  ;;  %s2470_s26 = sshll.u32 %s3354_s25, 8 }
 0x7d8   : > { %s3821_s25 = scalar_lea.hbm %s3874_s6, %s2470_s26 }
 0x846   : > { %v1256_v37 = vpop.xlane.xlu0 %1255 }
 0x847   : > { %3033 = vrcp.f32 %v1256_v37 }
 0x84a   : > { %v1253_v39 = vpop.xlane.xlu0 %1252 }
 0x84b   : > { %3035 = vrcp.f32 %v1253_v39 }
 0x84e   : > { %v1266_v46 = vpop.permute.xlu0 %1265 }
 0x84f   : > { %2659 = vmatprep.subr.mxu1 %v1266_v46 }
 0x850   : > { %2660 = vmatpush3.msra.mxu1 %v1266_v46 }
 0x851   : > { %2792 = vmatprep.subr.msk.bf16.mxu1 %vm3597_vm3, %v2790_v47  ;;  %v3034_v48 = vpop.eup %3033 }
 0x852   : > { %v1260_v51 = vmul.f32 %v3034_v48, %v3030_v32  ;;  %v1352_v52 = vpop.permute.xlu0 %1351 }
 0x855   : > { %v3036_v49 = vpop.eup %3035 }
 0x856   : > { %v1259_v50 = vmul.f32 %v3036_v49, %v3032_v35 }
 0x858   : > { %2661 = vmatprep.mubr.msk.f32.mxu1 %vm617_vm4, %v1259_v50 }
 0x859   : > { %2662 = vmatmul.mubr.msk.f32.vlgmr.msra.gmra.mrb[12].mxu1 %vm617_vm4, %v1260_v51 }
 0x85a   : > { %2795 = vmatpush3.bf16.xpose.msk.msra.mxu1 %vm3597_vm3, %v2790_v47  ;;  %2670 = vmatprep.mubr.msk.f32.mxu1 %vm526_vm2, %v1352_v52 }
 0x85b   : > { %2668 = vmatprep.subr.msk.mxu1 %vm526_vm2, %v1360_v53 }
 0x862   : > { %2669 = vmatpush3.xpose.msk.msra.mxu1 %vm526_vm2, %v1360_v53 }
 0x865   : > { %2671 = vmatmul.mubr.msk.f32.vlgmr.msra.gmra.mrb[14].mxu1 %vm526_vm2, %v1354_v54 }
 0x92c   : > { %v3711_v55 = vpop.f32.mrb[12].mxu1 }
 0x92d   : > { %v3713_v56 = vpop.f32.mrb[13].mxu1 }
 0x938   : > { %v2672_v57 = vpop.f32.mrb[14].mxu1 }
 0x939   : > { %v1437_v58 = vpop.f32.mrb[15].mxu1  ;;  %v1449_v59 = vsel %vm617_vm4, %v2672_v57, -inf }
 0x93a   : > { %1450 = vmax.xlane.f32.xlu1 %v1449_v59  ;;  %v1446_v60 = vsel %vm617_vm4, %v1437_v58, -inf }
 0x93b   : > { %1447 = vmax.xlane.f32.xlu0 %v1446_v60 }
 0x94b   : > { %2971 = vrot.lane.b32.xlu1 %v3603_v30, %s3282_s20 }
 0x94f   : > { %2976 = vrot.lane.b32.xlu1 %v3603_v30, %s3283_s0 }
 0x953   : > { %1566 = vrot.lane.b32.xlu1 %v3611_v33, %s3283_s0 }
 0x957   : > { %1560 = vrot.lane.b32.xlu1 %v3601_v29, %s3283_s0 }
 0x9c7   : > { %v1451_v61 = vpop.xlane.xlu1 %1450 }
 0x9c8   : > { %v1453_v62 = vsub.f32 %v2672_v57, %v1451_v61  ;;  %v1448_v63 = vpop.xlane.xlu0 %1447 }
 0x9c9   : > { %v1452_v0 = vsub.f32 %v1437_v58, %v1448_v63 }
 0x9ca   : > { %v1456_v1 = vmul.f32 1.442695, %v1453_v62 }
 0x9cb   : > { %v1454_v2 = vmul.f32 1.442695, %v1452_v0  ;;  %v2972_v3 = vpop.permute.xlu1 %2971 }
 0x9cc   : > { %3037 = vpow2.f32 %v1456_v1  ;;  %v2974_v4 = vunpack.i.h.bf16 %v2972_v3  ;;  %v2973_v5 = vunpack.i.l.bf16 %v2972_v3 }
 0x9cd   : > { %3039 = vpow2.f32 %v1454_v2 }
 0x9ce   : > { %v2796_v6 = vpack.c.bf16 %v2974_v4, %v2973_v5 }
 0x9cf   : > { %v2977_v14 = vpop.permute.xlu1 %2976 }
 0x9d0   : > { %2797 = vmatprep.subr.bf16.mxu0 %v2796_v6  ;;  %v2979_v16 = vunpack.i.h.bf16 %v2977_v14  ;;  %v2978_v17 = vunpack.i.l.bf16 %v2977_v14 }
 0x9d1   : > { %2799 = vmatpush3.bf16.msra.mxu0 %v2796_v6 }
 0x9d2   : > { %v2800_v19 = vpack.c.bf16 %v2979_v16, %v2978_v17 }
 0x9d3   : > { %v1567_v25 = vpop.permute.xlu1 %1566 }
 0x9d6   : > { %v3038_v7 = vpop.eup %3037 }
 0x9d7   : > { %v1461_v8 = vsel %vm617_vm4, %v3038_v7, 0.0  ;;  %v3040_v9 = vpop.eup %3039  ;;  %v1561_v26 = vpop.permute.xlu1 %1560 }
 0x9d8   : > { %1462 = vadd.xlane.f32.xlu0 %v1461_v8  ;;  %v1458_v10 = vsel %vm617_vm4, %v3040_v9, 0.0 }
 0x9dc   : > { %1459 = vadd.xlane.f32.xlu0 %v1458_v10 }
 0x9f2   : > { %1472 = vrot.lane.b32.xlu0 %v3611_v33, %s3282_s20 }
 0x9f6   : > { %1558 = vrot.lane.b32.xlu0 %v3593_v27, %s3283_s0  ;;  %s2257_s0 = scalar_lea.sflag [#allocation4], %s3548_s11 }
 0xa65   : > { %v1463_v11 = vpop.xlane.xlu0 %1462 }
 0xa66   : > { %3041 = vrcp.f32 %v1463_v11 }
 0xa69   : > { %v1460_v15 = vpop.xlane.xlu0 %1459 }
 0xa6a   : > { %3043 = vrcp.f32 %v1460_v15 }
 0xa6d   : > { %v1473_v18 = vpop.permute.xlu0 %1472 }
 0xa6e   : > { %2677 = vmatprep.subr.mxu0 %v1473_v18 }
 0xa6f   : > { %2678 = vmatpush3.msra.mxu0 %v1473_v18 }
 0xa70   : > { %2802 = vmatprep.subr.msk.bf16.mxu0 %vm3597_vm3, %v2800_v19  ;;  %v3042_v20 = vpop.eup %3041 }
 0xa71   : > { %v1467_v23 = vmul.f32 %v3042_v20, %v3038_v7  ;;  %v1559_v24 = vpop.permute.xlu0 %1558 }
 0xa74   : > { %v3044_v21 = vpop.eup %3043 }
 0xa75   : > { %v1466_v22 = vmul.f32 %v3044_v21, %v3040_v9 }
 0xa77   : > { %2679 = vmatprep.mubr.msk.f32.mxu0 %vm617_vm4, %v1466_v22 }
 0xa78   : > { %2680 = vmatmul.mubr.msk.f32.vlgmr.msra.gmra.mrb[10].mxu0 %vm617_vm4, %v1467_v23 }
 0xa79   : > { %2805 = vmatpush3.bf16.xpose.msk.msra.mxu0 %vm3597_vm3, %v2800_v19  ;;  %2688 = vmatprep.mubr.msk.f32.mxu0 %vm526_vm2, %v1559_v24 }
 0xa7a   : > { %2686 = vmatprep.subr.msk.mxu0 %vm526_vm2, %v1567_v25 }
 0xa81   : > { %2687 = vmatpush3.xpose.msk.msra.mxu0 %vm526_vm2, %v1567_v25 }
 0xa84   : > { %2689 = vmatmul.mubr.msk.f32.vlgmr.msra.gmra.mrb[12].mxu0 %vm526_vm2, %v1561_v26 }
 0xb4b   : > { %v3735_v31 = vpop.f32.mrb[10].mxu0 }
 0xb4c   : > { %v3737_v32 = vpop.f32.mrb[11].mxu0 }
 0xb57   : > { %v2690_v34 = vpop.f32.mrb[12].mxu0 }
 0xb58   : > { %v1644_v35 = vpop.f32.mrb[13].mxu0  ;;  %v1656_v36 = vsel %vm617_vm4, %v2690_v34, -inf }
 0xb59   : > { %1657 = vmax.xlane.f32.xlu1 %v1656_v36  ;;  %v1653_v37 = vsel %vm617_vm4, %v1644_v35, -inf }
 0xb5a   : > { %1654 = vmax.xlane.f32.xlu0 %v1653_v37 }
 0xb6a   : > { %2981 = vrot.lane.b32.xlu1 %v3603_v30, %s3284_s4 }
 0xb6e   : > { %2986 = vrot.lane.b32.xlu1 %v3603_v30, %s3285_s29 }
 0xb72   : > { %1773 = vrot.lane.b32.xlu1 %v3611_v33, %s3285_s29 }
 0xb76   : > { %1767 = vrot.lane.b32.xlu1 %v3601_v29, %s3285_s29 }
 0xbe6   : > { %v1658_v38 = vpop.xlane.xlu1 %1657 }
 0xbe7   : > { %v1660_v39 = vsub.f32 %v2690_v34, %v1658_v38  ;;  %v1655_v44 = vpop.xlane.xlu0 %1654 }
 0xbe8   : > { %v1659_v45 = vsub.f32 %v1644_v35, %v1655_v44 }
 0xbe9   : > { %v1663_v46 = vmul.f32 1.442695, %v1660_v39 }
 0xbea   : > { %v1661_v47 = vmul.f32 1.442695, %v1659_v45  ;;  %v2982_v48 = vpop.permute.xlu1 %2981 }
 0xbeb   : > { %3045 = vpow2.f32 %v1663_v46  ;;  %v2984_v49 = vunpack.i.h.bf16 %v2982_v48  ;;  %v2983_v50 = vunpack.i.l.bf16 %v2982_v48 }
 0xbec   : > { %3047 = vpow2.f32 %v1661_v47 }
 0xbed   : > { %v2806_v51 = vpack.c.bf16 %v2984_v49, %v2983_v50 }
 0xbee   : > { %v2987_v59 = vpop.permute.xlu1 %2986 }
 0xbef   : > { %2807 = vmatprep.subr.bf16.mxu1 %v2806_v51  ;;  %v2989_v61 = vunpack.i.h.bf16 %v2987_v59  ;;  %v2988_v62 = vunpack.i.l.bf16 %v2987_v59 }
 0xbf0   : > { %2809 = vmatpush3.bf16.msra.mxu1 %v2806_v51 }
 0xbf1   : > { %v2810_v0 = vpack.c.bf16 %v2989_v61, %v2988_v62 }
 0xbf2   : > { %v1774_v6 = vpop.permute.xlu1 %1773 }
 0xbf5   : > { %v3046_v52 = vpop.eup %3045 }
 0xbf6   : > { %v1668_v53 = vsel %vm617_vm4, %v3046_v52, 0.0  ;;  %v3048_v54 = vpop.eup %3047  ;;  %v1768_v7 = vpop.permute.xlu1 %1767 }
 0xbf7   : > { %1669 = vadd.xlane.f32.xlu0 %v1668_v53  ;;  %v1665_v57 = vsel %vm617_vm4, %v3048_v54, 0.0 }
 0xbfb   : > { %1666 = vadd.xlane.f32.xlu0 %v1665_v57 }
 0xc11   : > { %1679 = vrot.lane.b32.xlu0 %v3611_v33, %s3284_s4  ;;  %s3185_s4 = scalar_lea.vmem %s3815_s7, 256 }
 0xc12   : > { %p3186_p1 = scmp.ne.s32.totalorder %s3815_s7, %s3185_s4 }
 0xc14   : > { %p3187_p6 = pnand %p3186_p1, %p3906_p13 }
 0xc15   : > { %1765 = vrot.lane.b32.xlu0 %v3593_v27, %s3285_s29  ;;  %s3296_s29 = smov [#allocation10]  }
 0xc16   : > { %p3188_p10 = pneg %p3187_p6 }
 0xc84   : > { %v1670_v58 = vpop.xlane.xlu0 %1669 }
 0xc85   : > { %3049 = vrcp.f32 %v1670_v58 }
 0xc88   : > { %v1667_v60 = vpop.xlane.xlu0 %1666 }
 0xc89   : > { %3051 = vrcp.f32 %v1667_v60 }
 0xc8c   : > { %v1680_v63 = vpop.permute.xlu0 %1679 }
 0xc8d   : > { %2695 = vmatprep.subr.mxu1 %v1680_v63 }
 0xc8e   : > { %2696 = vmatpush3.msra.mxu1 %v1680_v63 }
 0xc8f   : > { %2812 = vmatprep.subr.msk.bf16.mxu1 %vm3597_vm3, %v2810_v0  ;;  %v3050_v1 = vpop.eup %3049 }
 0xc90   : > { %v1674_v4 = vmul.f32 %v3050_v1, %v3046_v52  ;;  %v1766_v5 = vpop.permute.xlu0 %1765 }
 0xc93   : > { %v3052_v2 = vpop.eup %3051 }
 0xc94   : > { %v1673_v3 = vmul.f32 %v3052_v2, %v3048_v54 }
 0xc96   : > { %2697 = vmatprep.mubr.msk.f32.mxu1 %vm617_vm4, %v1673_v3 }
 0xc97   : > { %2698 = vmatmul.mubr.msk.f32.vlgmr.msra.gmra.mrb[16].mxu1 %vm617_vm4, %v1674_v4 }
 0xc98   : > { %2815 = vmatpush3.bf16.xpose.msk.msra.mxu1 %vm3597_vm3, %v2810_v0  ;;  %2706 = vmatprep.mubr.msk.f32.mxu1 %vm526_vm2, %v1766_v5 }
 0xc99   : > { %2704 = vmatprep.subr.msk.mxu1 %vm526_vm2, %v1774_v6 }
 0xca0   : > { %2705 = vmatpush3.xpose.msk.msra.mxu1 %vm526_vm2, %v1774_v6 }
 0xca3   : > { %2707 = vmatmul.mubr.msk.f32.vlgmr.msra.gmra.mrb[18].mxu1 %vm526_vm2, %v1768_v7 }
 0xd6a   : > { %v3759_v8 = vpop.f32.mrb[16].mxu1 }
 0xd6b   : > { %v3761_v9 = vpop.f32.mrb[17].mxu1 }
 0xd76   : > { %v2708_v10 = vpop.f32.mrb[18].mxu1 }
 0xd77   : > { %v1851_v11 = vpop.f32.mrb[19].mxu1  ;;  %v1863_v14 = vsel %vm617_vm4, %v2708_v10, -inf }
 0xd78   : > { %1864 = vmax.xlane.f32.xlu1 %v1863_v14  ;;  %v1860_v15 = vsel %vm617_vm4, %v1851_v11, -inf }
 0xd79   : > { %1861 = vmax.xlane.f32.xlu0 %v1860_v15 }
 0xd89   : > { %2991 = vrot.lane.b32.xlu1 %v3603_v30, %s3286_s18 }
 0xd8d   : > { %2996 = vrot.lane.b32.xlu1 %v3603_v30, %s3287_s27 }
 0xd91   : > { %1980 = vrot.lane.b32.xlu1 %v3611_v33, %s3287_s27 }
 0xd95   : > { %1974 = vrot.lane.b32.xlu1 %v3601_v29, %s3287_s27 }
 0xe05   : > { %v1865_v16 = vpop.xlane.xlu1 %1864 }
 0xe06   : > { %v1867_v17 = vsub.f32 %v2708_v10, %v1865_v16  ;;  %v1862_v18 = vpop.xlane.xlu0 %1861 }
 0xe07   : > { %v1866_v19 = vsub.f32 %v1851_v11, %v1862_v18 }
 0xe08   : > { %v1870_v20 = vmul.f32 1.442695, %v1867_v17 }
 0xe09   : > { %v1868_v21 = vmul.f32 1.442695, %v1866_v19  ;;  %v2992_v22 = vpop.permute.xlu1 %2991 }
 0xe0a   : > { %3053 = vpow2.f32 %v1870_v20  ;;  %v2994_v23 = vunpack.i.h.bf16 %v2992_v22  ;;  %v2993_v24 = vunpack.i.l.bf16 %v2992_v22 }
 0xe0b   : > { %3055 = vpow2.f32 %v1868_v21 }
 0xe0c   : > { %v2816_v25 = vpack.c.bf16 %v2994_v23, %v2993_v24 }
 0xe0d   : > { %v2997_v37 = vpop.permute.xlu1 %2996 }
 0xe0e   : > { %2817 = vmatprep.subr.bf16.mxu0 %v2816_v25  ;;  %v2999_v39 = vunpack.i.h.bf16 %v2997_v37  ;;  %v2998_v44 = vunpack.i.l.bf16 %v2997_v37 }
 0xe0f   : > { %2819 = vmatpush3.bf16.msra.mxu0 %v2816_v25 }
 0xe10   : > { %v2820_v46 = vpack.c.bf16 %v2999_v39, %v2998_v44 }
 0xe11   : > { %v1981_v51 = vpop.permute.xlu1 %1980 }
 0xe14   : > { %v3054_v26 = vpop.eup %3053 }
 0xe15   : > { %v1875_v34 = vsel %vm617_vm4, %v3054_v26, 0.0  ;;  %v3056_v35 = vpop.eup %3055  ;;  %v1975_v52 = vpop.permute.xlu1 %1974 }
 0xe16   : > { %1876 = vadd.xlane.f32.xlu0 %v1875_v34  ;;  %v1872_v29 = vsel %vm617_vm4, %v3056_v35, 0.0 }
 0xe1a   : > { %1873 = vadd.xlane.f32.xlu0 %v1872_v29 }
 0xe30   : > { %1886 = vrot.lane.b32.xlu0 %v3611_v33, %s3286_s18  ;;  %s3189_s18 = sshll.u32 %s3296_s29, 4  ;;  %s3190_s18 = int_to_ptr.vmem [resolvable:$false] %s3189_s18 }
 0xe31   : > { %p3192_p4 = scmp.lt.s32.totalorder %s3815_s7, %s3190_s18 }
 0xe34   : > { %1972 = vrot.lane.b32.xlu0 %v3593_v27, %s3287_s27  ;;  %s3191_s27 = scalar_lea.vmem %s3190_s18, 512 }
 0xe35   : > { %p3193_p5 = scmp.lt.s32.totalorder %s3191_s27, %s3185_s4 }
 0xe37   : > { %p3194_p3 = por %p3193_p5, %p3192_p4 }
 0xe39   : > { %p3195_p7 = pnand %p3194_p3, %p3188_p10 }
 0xea3   : > { %v1877_v36 = vpop.xlane.xlu0 %1876 }
 0xea4   : > { %3057 = vrcp.f32 %v1877_v36 }
 0xea7   : > { %v1874_v38 = vpop.xlane.xlu0 %1873 }
 0xea8   : > { %3059 = vrcp.f32 %v1874_v38 }
 0xeab   : > { %v1887_v45 = vpop.permute.xlu0 %1886 }
 0xeac   : > { %2713 = vmatprep.subr.mxu0 %v1887_v45 }
 0xead   : > { %2714 = vmatpush3.msra.mxu0 %v1887_v45 }
 0xeae   : > { %2822 = vmatprep.subr.msk.bf16.mxu0 %vm3597_vm3, %v2820_v46  ;;  %v3058_v47 = vpop.eup %3057 }
 0xeaf   : > { %v1881_v50 = vmul.f32 %v3058_v47, %v3054_v26  ;;  %v1973_v27 = vpop.permute.xlu0 %1972 }
 0xeb2   : > { %v3060_v48 = vpop.eup %3059 }
 0xeb3   : > { %v1880_v49 = vmul.f32 %v3060_v48, %v3056_v35 }
 0xeb5   : > { %2715 = vmatprep.mubr.msk.f32.mxu0 %vm617_vm4, %v1880_v49 }
 0xeb6   : > { %2716 = vmatmul.mubr.msk.f32.vlgmr.msra.gmra.mrb[14].mxu0 %vm617_vm4, %v1881_v50 }
 0xeb7   : > { %2825 = vmatpush3.bf16.xpose.msk.msra.mxu0 %vm3597_vm3, %v2820_v46  ;;  %2724 = vmatprep.mubr.msk.f32.mxu0 %vm526_vm2, %v1973_v27 }
 0xeb8   : > { %2722 = vmatprep.subr.msk.mxu0 %vm526_vm2, %v1981_v51 }
 0xebf   : > { %2723 = vmatpush3.xpose.msk.msra.mxu0 %vm526_vm2, %v1981_v51 }
 0xec2   : > { %2725 = vmatmul.mubr.msk.f32.vlgmr.msra.gmra.mrb[16].mxu0 %vm526_vm2, %v1975_v52 }
 0xf89   : > { %v2717_v53 = vpop.f32.mrb[14].mxu0 }
 0xf8a   : > { %v1963_v54 = vpop.f32.mrb[15].mxu0 }
 0xf95   : > { %v2726_v57 = vpop.f32.mrb[16].mxu0 }
 0xf96   : > { %v2058_v58 = vpop.f32.mrb[17].mxu0  ;;  %v2070_v59 = vsel %vm617_vm4, %v2726_v57, -inf }
 0xf97   : > { %2071 = vmax.xlane.f32.xlu1 %v2070_v59  ;;  %v2067_v60 = vsel %vm617_vm4, %v2058_v58, -inf }
 0xf98   : > { %2068 = vmax.xlane.f32.xlu0 %v2067_v60 }
 0xfa8   : > { %3001 = vrot.lane.b32.xlu1 %v3603_v30, %s3288_s13 }
 0xfac   : > { %2181 = vrot.lane.b32.xlu1 %v3665_v43, %s3289_s19 }
 0xfb0   : > { %2183 = vrot.lane.b32.xlu1 %v3663_v42, %s3289_s19 }
 0xfb4   : > { %2191 = vrot.lane.b32.xlu1 %v3687_v12, %s3290_s16 }
 0xfb8   : > { %2199 = vrot.lane.b32.xlu1 %v3711_v55, %s3291_s17 }
 0xfbc   : > { %2207 = vrot.lane.b32.xlu1 %v3735_v31, %s3292_s12 }
 0xfc0   : > { %2215 = vrot.lane.b32.xlu1 %v3759_v8, %s3293_s14 }
 0xfc4   : > { %2223 = vrot.lane.b32.xlu1 %v2717_v53, %s3294_s2 }
0x1024   : > { %v2072_v28 = vpop.xlane.xlu1 %2071 }
0x1025   : > { %v2074_v30 = vsub.f32 %v2726_v57, %v2072_v28  ;;  %v2069_v43 = vpop.xlane.xlu0 %2068 }
0x1026   : > { %v2073_v42 = vsub.f32 %v2058_v58, %v2069_v43 }
0x1027   : > { %v2077_v61 = vmul.f32 1.442695, %v2074_v30 }
0x1028   : > { %v2075_v62 = vmul.f32 1.442695, %v2073_v42  ;;  %v3002_v63 = vpop.permute.xlu1 %3001 }
0x1029   : > { %3061 = vpow2.f32 %v2077_v61  ;;  %v3004_v12 = vunpack.i.h.bf16 %v3002_v63  ;;  %v3003_v0 = vunpack.i.l.bf16 %v3002_v63 }
0x102a   : > { %3063 = vpow2.f32 %v2075_v62 }
0x102b   : > { %v2826_v55 = vpack.c.bf16 %v3004_v12, %v3003_v0 }
0x102d   : > { %2827 = vmatprep.subr.bf16.mxu1 %v2826_v55 }
0x102e   : > { %2829 = vmatpush3.bf16.msra.mxu1 %v2826_v55 }
0x1033   : > { %v3062_v31 = vpop.eup %3061 }
0x1034   : > { %v2082_v1 = vsel %vm617_vm4, %v3062_v31, 0.0  ;;  %v3064_v2 = vpop.eup %3063 }
0x1035   : > { %2083 = vadd.xlane.f32.xlu0 %v2082_v1  ;;  %v2079_v3 = vsel %vm617_vm4, %v3064_v2, 0.0 }
0x1039   : > { %2080 = vadd.xlane.f32.xlu0 %v2079_v3 }
0x104f   : > { %2093 = vrot.lane.b32.xlu0 %v3611_v33, %s3288_s13 }
0x1053   : > { %2189 = vrot.lane.b32.xlu0 %v3689_v13, %s3290_s16 }
0x1057   : > { %2197 = vrot.lane.b32.xlu0 %v3713_v56, %s3291_s17 }
0x105b   : > { %2205 = vrot.lane.b32.xlu0 %v3737_v32, %s3292_s12  ;;  %v2182_v32 = vpop.permute.xlu1 %2181 }
0x105c   : > { %v2235_v22 = vsel %vm526_vm2, %v3661_v41, %v2182_v32 }
0x105f   : > { %2213 = vrot.lane.b32.xlu0 %v3761_v9, %s3293_s14  ;;  %v2184_v9 = vpop.permute.xlu1 %2183 }
0x1060   : > { %v2236_v21 = vsel %vm526_vm2, %v3659_v40, %v2184_v9 }
0x1063   : > { %2221 = vrot.lane.b32.xlu0 %v1963_v54, %s3294_s2  ;;  %v2192_v11 = vpop.permute.xlu1 %2191 }
0x1064   : > { %v2239_v23 = vsel %vm2237_vm5, %v2236_v21, %v2192_v11 }
0x1067   : > { %v2200_v15 = vpop.permute.xlu1 %2199 }
0x1068   : > { %v2242_v25 = vsel %vm2240_vm6, %v2239_v23, %v2200_v15 }
0x106b   : > { %v2208_v17 = vpop.permute.xlu1 %2207 }
0x106c   : > { %v2245_v35 = vsel %vm2243_vm7, %v2242_v25, %v2208_v17 }
0x106f   : > { %v2216_v19 = vpop.permute.xlu1 %2215 }
0x1070   : > { %v2248_v36 = vsel %vm2246_vm8, %v2245_v35, %v2216_v19 }
0x1073   : > { %v2224_v24 = vpop.permute.xlu1 %2223 }
0x1074   : > { %v2250_v37 = vsel %vm617_vm4, %v2248_v36, %v2224_v24 }
0x10c2   : > { %v2084_v4 = vpop.xlane.xlu0 %2083 }
0x10c3   : > { %3065 = vrcp.f32 %v2084_v4 }
0x10c6   : > { %v2081_v5 = vpop.xlane.xlu0 %2080 }
0x10c7   : > { %3067 = vrcp.f32 %v2081_v5 }
0x10ca   : > { %v2094_v6 = vpop.permute.xlu0 %2093 }
0x10cb   : > { %2731 = vmatprep.subr.mxu1 %v2094_v6 }
0x10cc   : > { %2732 = vmatpush3.msra.mxu1 %v2094_v6 }
0x10cd   : > { %v3066_v7 = vpop.eup %3065 }
0x10ce   : > { %v2088_v10 = vmul.f32 %v3066_v7, %v3062_v31  ;;  %v2190_v14 = vpop.permute.xlu0 %2189 }
0x10cf   : > { %v2238_v26 = vsel %vm2237_vm5, %v2235_v22, %v2190_v14 }
0x10d1   : > { %v3068_v33 = vpop.eup %3067 }
0x10d2   : > { %v2087_v8 = vmul.f32 %v3068_v33, %v3064_v2  ;;  %v2198_v16 = vpop.permute.xlu0 %2197 }
0x10d3   : > { %v2241_v29 = vsel %vm2240_vm6, %v2238_v26, %v2198_v16 }
0x10d4   : > { %2733 = vmatprep.mubr.msk.f32.mxu1 %vm617_vm4, %v2087_v8 }
0x10d5   : > { %2734 = vmatmul.mubr.msk.f32.vlgmr.msra.gmra.mrb[20].mxu1 %vm617_vm4, %v2088_v10 }
0x10d6   : > { %v2206_v18 = vpop.permute.xlu0 %2205 }
0x10d7   : > { %v2244_v40 = vsel %vm2243_vm7, %v2241_v29, %v2206_v18 }
0x10da   : > { %v2214_v20 = vpop.permute.xlu0 %2213 }
0x10db   : > { %v2247_v41 = vsel %vm2246_vm8, %v2244_v40, %v2214_v20 }
0x10de   : > { %v2222_v34 = vpop.permute.xlu0 %2221 }
0x10df   : > { %v2249_v39 = vsel %vm617_vm4, %v2247_v41, %v2222_v34 }
0x11a8   : > { %v2735_v13 = vpop.f32.mrb[20].mxu1 }
0x11a9   : > { %2231 = vrot.lane.b32.xlu1 %v2735_v13, %s3295_s30  ;;  %v2170_v56 = vpop.f32.mrb[21].mxu1 }
0x11aa   : > { %2229 = vrot.lane.b32.xlu0 %v2170_v56, %s3295_s30 }
0x121b   : > { %v2232_v38 = vpop.permute.xlu1 %2231 }
0x121c   : > { %v2253_v44 = vsel %vm2251_vm9, %v2250_v37, %v2232_v38  ;;  %v2230_v45 = vpop.permute.xlu0 %2229 }
0x121d   : > { %2255 = vst.msk [vmem:[%s335_s15 + $0x8] sm:$0xff] %vm350_vm1, %v2253_v44  ;;  %v2252_v46 = vsel %vm2251_vm9, %v2249_v39, %v2230_v45 }
0x121e   : > { %2254 = vst.msk [vmem:[%s335_s15] sm:$0xff] %vm350_vm1, %v2252_v46 }
0x121f   : > { %3198 = shalt.err (!%p3195_p7)
}
0x1220   : > { %s3199_s13 = scalar_lea.hbm %s3821_s25, 256  ;;  %s3203_s12 = scalar_lea.hbm %s3874_s6, 512 }
0x1221   : > { %p3200_p2 = scmp.ne.s32.totalorder %s3821_s25, %s3199_s13  ;;  %p3204_p0 = scmp.lt.u32.totalorder %s3821_s25, %s3874_s6 }
0x1222   : > { %p3205_p9 = scmp.lt.u32.totalorder %s3203_s12, %s3199_s13  ;;  %p3207_p1 = scmp.lt.u32.totalorder %s3199_s13, %s3821_s25 }
0x1223   : > { %p3201_p8 = pnand %p3200_p2, %p3906_p13 }
0x1224   : > { %p3206_p12 = por %p3205_p9, %p3204_p0 }
0x1225   : > { %p3202_p11 = pneg %p3201_p8 }
0x1226   : > { %p3208_p6 = por %p3207_p1, %p3206_p12 }
0x1228   : > { %p3209_p10 = pnand %p3208_p6, %p3202_p11 }
0x122a   : > { %3212 = shalt.err (!%p3209_p10)
}
0x122b   : > { %s3297_s30 = smov 128  }
0x122c   : > { %2842 = dma.vmem_to_hbm [thread:$0]  (%p3906_p13), %s3815_s7, 256, %s3821_s25, %s2257_s0, %s3297_s30, %s3297_s30, %s3290_s16  }
0x122d PF: > { %s2285_s15 = sand.u32 1, %s3251_s21   ;;  %p3907_p4 = scmp.ne.s32.totalorder %s3885_s28, 0 }
0x122e   : > { %p3908_p5 = scmp.ge.s32.totalorder %s3263_s24, 2  ;;  %s2286_s26 = scalar_lea.sflag [#allocation4], %s2285_s15 }
0x1230   : > { %p2859_p3 = pnand %p3908_p5, %p3907_p4 }
0x1232   : > { %3246 = dma.done.wait (!%p2859_p3), %s2286_s26, 256  }
0x1233   : > { %3248 = vsyncadd (!%p2859_p3), %s2286_s26, 4294967040  ;;  %s3909_s9 = sld [smem:[#allocation16_spill]]  ;;  %p23_p7 = scmp.ge.s32.totalorder %s3449_s8, 4  }
0x1234   : > { %s3910_s21 = smov %s3255_s22  ;;  %s3911_s22 = smov %s3259_s23 }
0x1235   : > { %s3913_s24 = smov %s3449_s8  ;;  %25 = sbr.rel (!%p23_p7) target bundleno = 12 (0xc), region = 110 }
0x1239   : > { %s3912_s23 = smov %s3909_s9 }
0x123c   :  { %2291 = vsyncpa [#allocation3], 1 }
0x123d   :  { %2293 = vsyncpa [#allocation3 + $0x1], 1 }
0x123e   :  { %2294 = vsyncpa [#allocation6], 1 }
0x123f   :  { %2296 = vsyncpa [#allocation6 + $0x1], 1 }
0x1240   :  { %2297 = vsyncpa [#allocation9], 1 }
0x1241   :  { %2298 = vsyncpa [#allocation4], 1 }
0x1242   :  { %2300 = vsyncpa [#allocation4 + $0x1], 1 }

</bundles_post_ra>
